<compile_context>
chip_gen: v6e
topology: v6e:2x2x1
jax: 0.10.0
libtpu: 0.0.40
codegen_flags: <defaults>
</compile_context>

<pallas_src>
import functools

import jax
import jax.numpy as jnp
from jax.experimental import pallas as pl
from jax.experimental.pallas import tpu as pltpu


# ----------------------------------------------------------------------------
# Pallas kernel: recurrent (serial) part of one LSTM layer, both directions.
# ----------------------------------------------------------------------------
def _lstm_recurrent_kernel(gx_ref, whh_hbm, out_ref, hn_ref, cn_ref,
                           whh_vmem, h_sc, c_sc, *, hidden_size, tt):
    """Grid: (num_dirs [parallel], T // tt [arbitrary, sequential]).

    gx_ref  : (tt, B, 4H) f32  precomputed x @ W_ih^T + bias for this chunk
    whh_hbm : (num_dirs, H, 4H) bf16, raw HBM ref (copied once per direction)
    out_ref : (tt, B, H)  f32  per-step hidden states
    hn/cn   : (B, H)      f32  final states (written on the last chunk only)
    """
    d = pl.program_id(0)
    tc = pl.program_id(1)
    H = hidden_size

    @pl.when(tc == 0)
    def _():
        # Resident recurrent weights: one DMA per direction, single-buffered.
        pltpu.sync_copy(whh_hbm.at[d], whh_vmem)
        h_sc[...] = jnp.zeros_like(h_sc)
        c_sc[...] = jnp.zeros_like(c_sc)

    def step(i, carry):
        h, c = carry
        # gates: (B, 4H) in PyTorch order [i, f, g, o]; bf16 matmul, f32 acc.
        gates = (jnp.dot(h.astype(jnp.bfloat16), whh_vmem[...],
                         preferred_element_type=jnp.float32)
                 + gx_ref[i])
        i_g = jax.nn.sigmoid(gates[:, 0 * H:1 * H])
        f_g = jax.nn.sigmoid(gates[:, 1 * H:2 * H])
        g_g = jnp.tanh(gates[:, 2 * H:3 * H])
        o_g = jax.nn.sigmoid(gates[:, 3 * H:4 * H])
        c_new = f_g * c + i_g * g_g
        h_new = o_g * jnp.tanh(c_new)
        out_ref[i] = h_new
        return h_new, c_new

    h, c = jax.lax.fori_loop(0, tt, step, (h_sc[...], c_sc[...]), unroll=True)
    h_sc[...] = h
    c_sc[...] = c

    @pl.when(tc == pl.num_programs(1) - 1)
    def _():
        hn_ref[...] = h
        cn_ref[...] = c


def _pick_tt(T, max_tt=32):
    """Largest divisor of T not exceeding max_tt (time-chunk size)."""
    tt = 1
    for cand in range(1, min(T, max_tt) + 1):
        if T % cand == 0:
            tt = cand
    return tt


def _lstm_recurrent(gates_x, whh_t_bf16, *, max_tt=32):
    """gates_x: (ND, T, B, 4H) f32 -- hoisted x-projection (+bias).
       whh_t_bf16: (ND, H, 4H) bf16 -- transposed recurrent weights.
       Returns out (ND, T, B, H), h_n (ND, B, H), c_n (ND, B, H)."""
    ND, T, B, G = gates_x.shape
    H = whh_t_bf16.shape[1]
    assert G == 4 * H
    TT = _pick_tt(T, max_tt)
    n_chunks = T // TT

    kernel = functools.partial(_lstm_recurrent_kernel, hidden_size=H, tt=TT)

    out, h_n, c_n = pl.pallas_call(
        kernel,
        out_shape=(
            jax.ShapeDtypeStruct((ND, T, B, H), jnp.float32),
            jax.ShapeDtypeStruct((ND, B, H), jnp.float32),
            jax.ShapeDtypeStruct((ND, B, H), jnp.float32),
        ),
        grid_spec=pltpu.PrefetchScalarGridSpec(
            num_scalar_prefetch=0,
            grid=(ND, n_chunks),
            in_specs=[
                # per-chunk precomputed input gates
                pl.BlockSpec((None, TT, B, 4 * H), lambda d, tc: (d, tc, 0, 0)),
                # recurrent weights stay in HBM; copied manually once per dir
                pl.BlockSpec(memory_space=pl.ANY),
            ],
            out_specs=[
                pl.BlockSpec((None, TT, B, H), lambda d, tc: (d, tc, 0, 0)),
                pl.BlockSpec((None, B, H), lambda d, tc: (d, 0, 0)),
                pl.BlockSpec((None, B, H), lambda d, tc: (d, 0, 0)),
            ],
            scratch_shapes=[
                pltpu.VMEM((H, 4 * H), jnp.bfloat16),  # resident W_hh^T (1-buffered)
                pltpu.VMEM((B, H), jnp.float32),        # h carry
                pltpu.VMEM((B, H), jnp.float32),        # c carry
            ],
        ),
        compiler_params=pltpu.CompilerParams(
            # direction axis: independent (2 TCs on v7x); time axis: serial
            dimension_semantics=("parallel", "arbitrary")),
        cost_estimate=pl.CostEstimate(
            flops=2 * ND * T * B * H * 4 * H,
            transcendentals=5 * ND * T * B * H,
            bytes_accessed=(gates_x.size * 4 + ND * T * B * H * 4
                            + whh_t_bf16.size * 2 + 2 * ND * B * H * 4),
        ),
    )(gates_x, whh_t_bf16)
    return out, h_n, c_n


# ----------------------------------------------------------------------------
# RNNLayer.forward(x, hidden=None, lengths=None), mode='lstm', batch_first=True
# ----------------------------------------------------------------------------
def rnn_layer_forward(x_btd, params, num_layers, bidirectional):
    """x_btd: (batch, seq, input_size).
    Returns:
      outputs: (batch, seq, hidden * num_directions)
      hidden:  (h_n, c_n), each (num_layers * num_directions, batch, hidden)
    """
    num_dirs = 2 if bidirectional else 1
    B = x_btd.shape[0]
    x_tbd = jnp.transpose(x_btd, (1, 0, 2)).astype(jnp.float32)   # (T, B, D)

    # Pad batch to a multiple of 8 (sublane-dense VPU ops / stores).
    B_pad = ((B + 7) // 8) * 8
    if B_pad != B:
        x_tbd = jnp.pad(x_tbd, ((0, 0), (0, B_pad - B), (0, 0)))

    h_list, c_list = [], []
    layer_in = x_tbd
    for layer in range(num_layers):
        w_ih = jnp.stack([params[(layer, d)][0] for d in range(num_dirs)])   # (ND,4H,Din)
        w_hh = jnp.stack([params[(layer, d)][1] for d in range(num_dirs)])   # (ND,4H,H)
        bias = jnp.stack([params[(layer, d)][2] + params[(layer, d)][3]
                          for d in range(num_dirs)])                         # (ND,4H)

        if num_dirs == 2:
            x_dirs = jnp.stack([layer_in, jnp.flip(layer_in, axis=0)])       # (2,T,Bp,Din)
        else:
            x_dirs = layer_in[None]

        # Hoisted input projection: one large batched matmul in XLA.
        gates_x = (jnp.einsum('ntbf,ngf->ntbg', x_dirs, w_ih,
                              preferred_element_type=jnp.float32)
                   + bias[:, None, None, :])                                  # (ND,T,Bp,4H)

        whh_t = jnp.swapaxes(w_hh, 1, 2).astype(jnp.bfloat16)                # (ND,H,4H)

        out, h_n, c_n = _lstm_recurrent(gates_x, whh_t)                      # (ND,T,Bp,H)

        if num_dirs == 2:
            layer_in = jnp.concatenate([out[0], jnp.flip(out[1], axis=0)], axis=-1)
        else:
            layer_in = out[0]
        for d in range(num_dirs):
            h_list.append(h_n[d])
            c_list.append(c_n[d])

    outputs = jnp.transpose(layer_in, (1, 0, 2))[:B]          # (B, T, H * ND)
    h_n = jnp.stack(h_list, axis=0)[:, :B, :]                 # (L*ND, B, H)
    c_n = jnp.stack(c_list, axis=0)[:, :B, :]
    return outputs, (h_n, c_n)


# ----------------------------------------------------------------------------
# Parameter init (mimics nn.LSTM: U(-1/sqrt(H), 1/sqrt(H)))
# ----------------------------------------------------------------------------
def init_lstm_params(key, input_size, hidden_size, num_layers, bidirectional):
    num_dirs = 2 if bidirectional else 1
    bound = 1.0 / jnp.sqrt(jnp.float32(hidden_size))
    params = {}
    for layer in range(num_layers):
        layer_in = input_size if layer == 0 else hidden_size * num_dirs
        for d in range(num_dirs):
            key, k1, k2, k3, k4 = jax.random.split(key, 5)
            w_ih = jax.random.uniform(k1, (4 * hidden_size, layer_in),
                                      jnp.float32, -bound, bound)
            w_hh = jax.random.uniform(k2, (4 * hidden_size, hidden_size),
                                      jnp.float32, -bound, bound)
            b_ih = jax.random.uniform(k3, (4 * hidden_size,), jnp.float32, -bound, bound)
            b_hh = jax.random.uniform(k4, (4 * hidden_size,), jnp.float32, -bound, bound)
            params[(layer, d)] = (w_ih, w_hh, b_ih, b_hh)
    return params


# ----------------------------------------------------------------------------
# Pure-JAX reference (f32 lax.scan) for correctness checking
# ----------------------------------------------------------------------------
def _reference_single_direction(x_tbd, w_ih, w_hh, b_ih, b_hh):
    H = w_hh.shape[1]
    B = x_tbd.shape[1]

    def step(carry, x_t):
        h, c = carry
        gates = (jnp.dot(x_t, w_ih.T, preferred_element_type=jnp.float32)
                 + jnp.dot(h, w_hh.T, preferred_element_type=jnp.float32)
                 + b_ih + b_hh)
        i = jax.nn.sigmoid(gates[:, 0 * H:1 * H])
        f = jax.nn.sigmoid(gates[:, 1 * H:2 * H])
        g = jnp.tanh(gates[:, 2 * H:3 * H])
        o = jax.nn.sigmoid(gates[:, 3 * H:4 * H])
        c_new = f * c + i * g
        h_new = o * jnp.tanh(c_new)
        return (h_new, c_new), h_new

    init = (jnp.zeros((B, H), jnp.float32), jnp.zeros((B, H), jnp.float32))
    (h_n, c_n), outs = jax.lax.scan(step, init, x_tbd)
    return outs, h_n, c_n


def _reference_forward(x_btd, params, num_layers, bidirectional):
    num_dirs = 2 if bidirectional else 1
    layer_in = jnp.transpose(x_btd, (1, 0, 2))
    h_list, c_list = [], []
    for layer in range(num_layers):
        outs = []
        for d in range(num_dirs):
            w_ih, w_hh, b_ih, b_hh = params[(layer, d)]
            inp = layer_in if d == 0 else jnp.flip(layer_in, axis=0)
            o, h, c = _reference_single_direction(inp, w_ih, w_hh, b_ih, b_hh)
            if d == 1:
                o = jnp.flip(o, axis=0)
            outs.append(o)
            h_list.append(h)
            c_list.append(c)
        layer_in = jnp.concatenate(outs, axis=-1) if num_dirs == 2 else outs[0]
    outputs = jnp.transpose(layer_in, (1, 0, 2))
    return outputs, (jnp.stack(h_list, axis=0), jnp.stack(c_list, axis=0))


if __name__ == "__main__":
    # Small config consistent with the module's constructor.
    batch, seq_len = 2, 8
    input_size, rnn_size = 16, 32
    num_layers, bidirectional = 2, True

    key = jax.random.PRNGKey(0)
    key, kx = jax.random.split(key)
    x = jax.random.normal(kx, (batch, seq_len, input_size), jnp.float32)

    params = init_lstm_params(key, input_size, rnn_size, num_layers, bidirectional)

    outputs, (h_n, c_n) = rnn_layer_forward(x, params, num_layers, bidirectional)
    jax.block_until_ready((outputs, h_n, c_n))

    # Full-stack correctness check vs a pure-JAX f32 scan reference.
    # (Tolerance reflects the intentional bf16 recurrent matmul; an all-f32
    #  path would be ~1e-5.)
    out_r, (hn_r, cn_r) = _reference_forward(x, params, num_layers, bidirectional)
    assert jnp.allclose(outputs, out_r, atol=1e-2, rtol=1e-2)
    assert jnp.allclose(h_n, hn_r, atol=1e-2, rtol=1e-2)
    assert jnp.allclose(c_n, cn_r, atol=1e-2, rtol=1e-2)

    num_dirs = 2 if bidirectional else 1
    assert outputs.shape == (batch, seq_len, rnn_size * num_dirs)
    assert h_n.shape == (num_layers * num_dirs, batch, rnn_size)
    assert c_n.shape == (num_layers * num_dirs, batch, rnn_size)

    print("KERNEL_OK")
</pallas_src>

<mosaic_0001>
module attributes {stable_mosaic.version = 11 : i64} {
  func.func @_lstm_recurrent_kernel(%arg0: i32, %arg1: i32, %arg2: memref<1x8x8x128xf32, #tpu.memory_space<vmem>>, %arg3: memref<2x32x128xbf16, #tpu.memory_space<any>>, %arg4: memref<1x8x8x32xf32, #tpu.memory_space<vmem>>, %arg5: memref<1x8x32xf32, #tpu.memory_space<vmem>>, %arg6: memref<1x8x32xf32, #tpu.memory_space<vmem>>, %arg7: memref<32x128xbf16, #tpu.memory_space<vmem>>, %arg8: memref<8x32xf32, #tpu.memory_space<vmem>>, %arg9: memref<8x32xf32, #tpu.memory_space<vmem>>) attributes {dimension_semantics = [#tpu.dimension_semantics<parallel>, #tpu.dimension_semantics<arbitrary>], iteration_bounds = array<i64: 2, 1>, scalar_prefetch = 0 : i64, scratch_operands = 3 : i64, tpu.core_type = #tpu.core_type<tc>, window_params = [{transform_indices = @transform_0, window_bounds = array<i64: 1, 8, 8, 128>}, {}, {transform_indices = @transform_2, window_bounds = array<i64: 1, 8, 8, 32>}, {transform_indices = @transform_3, window_bounds = array<i64: 1, 8, 32>}, {transform_indices = @transform_4, window_bounds = array<i64: 1, 8, 32>}]} {
    %c0_i32 = arith.constant 0 : i32
    %0 = arith.cmpi eq, %arg1, %c0_i32 : i32
    %1 = arith.extui %0 : i1 to i32
    %c0_i32_0 = arith.constant 0 : i32
    %2 = arith.cmpi ne, %1, %c0_i32_0 : i32
    scf.if %2 {
      "tpu.region"() ({
        %302 = tpu.sem_alloc : memref<!tpu.dma_semaphore, #tpu.memory_space<semaphore_mem>>
        %c0_i32_112 = arith.constant 0 : i32
        %c0_i32_113 = arith.constant 0 : i32
        %303 = tpu.memref_slice %arg3[%arg0, %c0_i32_112, %c0_i32_113] : memref<2x32x128xbf16, #tpu.memory_space<any>> -> memref<1x32x128xbf16, #tpu.memory_space<any>>
        %304 = tpu.memref_squeeze %303 : memref<1x32x128xbf16, #tpu.memory_space<any>> -> memref<32x128xbf16, #tpu.memory_space<any>>
        tpu.enqueue_dma source(%304 : memref<32x128xbf16, #tpu.memory_space<any>>) target(%arg7 : memref<32x128xbf16, #tpu.memory_space<vmem>>) target_semaphore(%302 : memref<!tpu.dma_semaphore, #tpu.memory_space<semaphore_mem>>)
        %c0_i32_114 = arith.constant 0 : i32
        %c0_i32_115 = arith.constant 0 : i32
        %305 = tpu.memref_slice %arg3[%arg0, %c0_i32_114, %c0_i32_115] : memref<2x32x128xbf16, #tpu.memory_space<any>> -> memref<1x32x128xbf16, #tpu.memory_space<any>>
        %306 = tpu.memref_squeeze %305 : memref<1x32x128xbf16, #tpu.memory_space<any>> -> memref<32x128xbf16, #tpu.memory_space<any>>
        tpu.wait_dma2 semaphore(%302 : memref<!tpu.dma_semaphore, #tpu.memory_space<semaphore_mem>>) src(%306 : memref<32x128xbf16, #tpu.memory_space<any>>) dst(%arg7 : memref<32x128xbf16, #tpu.memory_space<vmem>>)
        tpu.yield
      }) : () -> ()
      %cst_106 = arith.constant 0.000000e+00 : f32
      %298 = vector.broadcast %cst_106 : f32 to vector<8x32xf32>
      %c0_107 = arith.constant 0 : index
      %c0_108 = arith.constant 0 : index
      %299 = vector.load %arg8[%c0_107, %c0_108] : memref<8x32xf32, #tpu.memory_space<vmem>>, vector<8x32xf32>
      tpu.vector_store %arg8[%c0_107, %c0_108], %298 {strides = array<i32>} : memref<8x32xf32, #tpu.memory_space<vmem>>, vector<8x32xf32>,
      %cst_109 = arith.constant 0.000000e+00 : f32
      %300 = vector.broadcast %cst_109 : f32 to vector<8x32xf32>
      %c0_110 = arith.constant 0 : index
      %c0_111 = arith.constant 0 : index
      %301 = vector.load %arg9[%c0_110, %c0_111] : memref<8x32xf32, #tpu.memory_space<vmem>>, vector<8x32xf32>
      tpu.vector_store %arg9[%c0_110, %c0_111], %300 {strides = array<i32>} : memref<8x32xf32, #tpu.memory_space<vmem>>, vector<8x32xf32>,
    } else {
    }
    %c0 = arith.constant 0 : index
    %c0_1 = arith.constant 0 : index
    %3 = vector.load %arg8[%c0, %c0_1] : memref<8x32xf32, #tpu.memory_space<vmem>>, vector<8x32xf32>
    %c0_2 = arith.constant 0 : index
    %c0_3 = arith.constant 0 : index
    %4 = vector.load %arg9[%c0_2, %c0_3] : memref<8x32xf32, #tpu.memory_space<vmem>>, vector<8x32xf32>
    %c0_i32_4 = arith.constant 0 : i32
    %5 = arith.truncf %3 : vector<8x32xf32> to vector<8x32xbf16>
    %c0_5 = arith.constant 0 : index
    %c0_6 = arith.constant 0 : index
    %6 = vector.load %arg7[%c0_5, %c0_6] : memref<32x128xbf16, #tpu.memory_space<vmem>>, vector<32x128xbf16>
    %cst = arith.constant dense<0.000000e+00> : vector<8x128xf32>
    %7 = tpu.matmul %5, %6, %cst {dimension_numbers = #tpu.dot_dimension_numbers<[1], [0], [0], [1], [0, 0, 1, 1], [], []>} : vector<8x32xbf16>, vector<32x128xbf16>, vector<8x128xf32> -> vector<8x128xf32>
    %c0_7 = arith.constant 0 : index
    %8 = arith.index_cast %c0_i32_4 : i32 to index
    %c0_8 = arith.constant 0 : index
    %c0_9 = arith.constant 0 : index
    %9 = vector.load %arg2[%c0_7, %8, %c0_8, %c0_9] : memref<1x8x8x128xf32, #tpu.memory_space<vmem>>, vector<1x1x8x128xf32>
    %10 = vector.shape_cast %9 : vector<1x1x8x128xf32> to vector<8x128xf32>
    %11 = arith.addf %7, %10 : vector<8x128xf32>
    %12 = vector.extract_strided_slice %11 {offsets = [0, 0], sizes = [8, 32], strides = [1, 1]} : vector<8x128xf32> to vector<8x32xf32>
    %13 = arith.negf %12 : vector<8x32xf32>
    %14 = math.exp %13 : vector<8x32xf32>
    %cst_10 = arith.constant 1.000000e+00 : f32
    %15 = vector.broadcast %cst_10 : f32 to vector<8x32xf32>
    %16 = arith.addf %15, %14 : vector<8x32xf32>
    %17 = arith.divf %15, %16 : vector<8x32xf32>
    %18 = vector.extract_strided_slice %11 {offsets = [0, 32], sizes = [8, 32], strides = [1, 1]} : vector<8x128xf32> to vector<8x32xf32>
    %19 = arith.negf %18 : vector<8x32xf32>
    %20 = math.exp %19 : vector<8x32xf32>
    %cst_11 = arith.constant 1.000000e+00 : f32
    %21 = vector.broadcast %cst_11 : f32 to vector<8x32xf32>
    %22 = arith.addf %21, %20 : vector<8x32xf32>
    %23 = arith.divf %21, %22 : vector<8x32xf32>
    %24 = vector.extract_strided_slice %11 {offsets = [0, 64], sizes = [8, 32], strides = [1, 1]} : vector<8x128xf32> to vector<8x32xf32>
    %25 = math.tanh %24 : vector<8x32xf32>
    %26 = vector.extract_strided_slice %11 {offsets = [0, 96], sizes = [8, 32], strides = [1, 1]} : vector<8x128xf32> to vector<8x32xf32>
    %27 = arith.negf %26 : vector<8x32xf32>
    %28 = math.exp %27 : vector<8x32xf32>
    %cst_12 = arith.constant 1.000000e+00 : f32
    %29 = vector.broadcast %cst_12 : f32 to vector<8x32xf32>
    %30 = arith.addf %29, %28 : vector<8x32xf32>
    %31 = arith.divf %29, %30 : vector<8x32xf32>
    %32 = arith.mulf %23, %4 : vector<8x32xf32>
    %33 = arith.mulf %17, %25 : vector<8x32xf32>
    %34 = arith.addf %32, %33 : vector<8x32xf32>
    %35 = math.tanh %34 : vector<8x32xf32>
    %36 = arith.mulf %31, %35 : vector<8x32xf32>
    %c0_13 = arith.constant 0 : index
    %37 = arith.index_cast %c0_i32_4 : i32 to index
    %c0_14 = arith.constant 0 : index
    %c0_15 = arith.constant 0 : index
    %38 = vector.load %arg4[%c0_13, %37, %c0_14, %c0_15] : memref<1x8x8x32xf32, #tpu.memory_space<vmem>>, vector<1x1x8x32xf32>
    %39 = vector.shape_cast %38 : vector<1x1x8x32xf32> to vector<8x32xf32>
    %40 = vector.shape_cast %36 : vector<8x32xf32> to vector<1x1x8x32xf32>
    tpu.vector_store %arg4[%c0_13, %37, %c0_14, %c0_15], %40 {strides = array<i32>} : memref<1x8x8x32xf32, #tpu.memory_space<vmem>>, vector<1x1x8x32xf32>,
    %c1_i32 = arith.constant 1 : i32
    %41 = arith.truncf %36 : vector<8x32xf32> to vector<8x32xbf16>
    %c0_16 = arith.constant 0 : index
    %c0_17 = arith.constant 0 : index
    %42 = vector.load %arg7[%c0_16, %c0_17] : memref<32x128xbf16, #tpu.memory_space<vmem>>, vector<32x128xbf16>
    %cst_18 = arith.constant dense<0.000000e+00> : vector<8x128xf32>
    %43 = tpu.matmul %41, %42, %cst_18 {dimension_numbers = #tpu.dot_dimension_numbers<[1], [0], [0], [1], [0, 0, 1, 1], [], []>} : vector<8x32xbf16>, vector<32x128xbf16>, vector<8x128xf32> -> vector<8x128xf32>
    %c0_19 = arith.constant 0 : index
    %44 = arith.index_cast %c1_i32 : i32 to index
    %c0_20 = arith.constant 0 : index
    %c0_21 = arith.constant 0 : index
    %45 = vector.load %arg2[%c0_19, %44, %c0_20, %c0_21] : memref<1x8x8x128xf32, #tpu.memory_space<vmem>>, vector<1x1x8x128xf32>
    %46 = vector.shape_cast %45 : vector<1x1x8x128xf32> to vector<8x128xf32>
    %47 = arith.addf %43, %46 : vector<8x128xf32>
    %48 = vector.extract_strided_slice %47 {offsets = [0, 0], sizes = [8, 32], strides = [1, 1]} : vector<8x128xf32> to vector<8x32xf32>
    %49 = arith.negf %48 : vector<8x32xf32>
    %50 = math.exp %49 : vector<8x32xf32>
    %cst_22 = arith.constant 1.000000e+00 : f32
    %51 = vector.broadcast %cst_22 : f32 to vector<8x32xf32>
    %52 = arith.addf %51, %50 : vector<8x32xf32>
    %53 = arith.divf %51, %52 : vector<8x32xf32>
    %54 = vector.extract_strided_slice %47 {offsets = [0, 32], sizes = [8, 32], strides = [1, 1]} : vector<8x128xf32> to vector<8x32xf32>
    %55 = arith.negf %54 : vector<8x32xf32>
    %56 = math.exp %55 : vector<8x32xf32>
    %cst_23 = arith.constant 1.000000e+00 : f32
    %57 = vector.broadcast %cst_23 : f32 to vector<8x32xf32>
    %58 = arith.addf %57, %56 : vector<8x32xf32>
    %59 = arith.divf %57, %58 : vector<8x32xf32>
    %60 = vector.extract_strided_slice %47 {offsets = [0, 64], sizes = [8, 32], strides = [1, 1]} : vector<8x128xf32> to vector<8x32xf32>
    %61 = math.tanh %60 : vector<8x32xf32>
    %62 = vector.extract_strided_slice %47 {offsets = [0, 96], sizes = [8, 32], strides = [1, 1]} : vector<8x128xf32> to vector<8x32xf32>
    %63 = arith.negf %62 : vector<8x32xf32>
    %64 = math.exp %63 : vector<8x32xf32>
    %cst_24 = arith.constant 1.000000e+00 : f32
    %65 = vector.broadcast %cst_24 : f32 to vector<8x32xf32>
    %66 = arith.addf %65, %64 : vector<8x32xf32>
    %67 = arith.divf %65, %66 : vector<8x32xf32>
    %68 = arith.mulf %59, %34 : vector<8x32xf32>
    %69 = arith.mulf %53, %61 : vector<8x32xf32>
    %70 = arith.addf %68, %69 : vector<8x32xf32>
    %71 = math.tanh %70 : vector<8x32xf32>
    %72 = arith.mulf %67, %71 : vector<8x32xf32>
    %c0_25 = arith.constant 0 : index
    %73 = arith.index_cast %c1_i32 : i32 to index
    %c0_26 = arith.constant 0 : index
    %c0_27 = arith.constant 0 : index
    %74 = vector.load %arg4[%c0_25, %73, %c0_26, %c0_27] : memref<1x8x8x32xf32, #tpu.memory_space<vmem>>, vector<1x1x8x32xf32>
    %75 = vector.shape_cast %74 : vector<1x1x8x32xf32> to vector<8x32xf32>
    %76 = vector.shape_cast %72 : vector<8x32xf32> to vector<1x1x8x32xf32>
    tpu.vector_store %arg4[%c0_25, %73, %c0_26, %c0_27], %76 {strides = array<i32>} : memref<1x8x8x32xf32, #tpu.memory_space<vmem>>, vector<1x1x8x32xf32>,
    %c2_i32 = arith.constant 2 : i32
    %77 = arith.truncf %72 : vector<8x32xf32> to vector<8x32xbf16>
    %c0_28 = arith.constant 0 : index
    %c0_29 = arith.constant 0 : index
    %78 = vector.load %arg7[%c0_28, %c0_29] : memref<32x128xbf16, #tpu.memory_space<vmem>>, vector<32x128xbf16>
    %cst_30 = arith.constant dense<0.000000e+00> : vector<8x128xf32>
    %79 = tpu.matmul %77, %78, %cst_30 {dimension_numbers = #tpu.dot_dimension_numbers<[1], [0], [0], [1], [0, 0, 1, 1], [], []>} : vector<8x32xbf16>, vector<32x128xbf16>, vector<8x128xf32> -> vector<8x128xf32>
    %c0_31 = arith.constant 0 : index
    %80 = arith.index_cast %c2_i32 : i32 to index
    %c0_32 = arith.constant 0 : index
    %c0_33 = arith.constant 0 : index
    %81 = vector.load %arg2[%c0_31, %80, %c0_32, %c0_33] : memref<1x8x8x128xf32, #tpu.memory_space<vmem>>, vector<1x1x8x128xf32>
    %82 = vector.shape_cast %81 : vector<1x1x8x128xf32> to vector<8x128xf32>
    %83 = arith.addf %79, %82 : vector<8x128xf32>
    %84 = vector.extract_strided_slice %83 {offsets = [0, 0], sizes = [8, 32], strides = [1, 1]} : vector<8x128xf32> to vector<8x32xf32>
    %85 = arith.negf %84 : vector<8x32xf32>
    %86 = math.exp %85 : vector<8x32xf32>
    %cst_34 = arith.constant 1.000000e+00 : f32
    %87 = vector.broadcast %cst_34 : f32 to vector<8x32xf32>
    %88 = arith.addf %87, %86 : vector<8x32xf32>
    %89 = arith.divf %87, %88 : vector<8x32xf32>
    %90 = vector.extract_strided_slice %83 {offsets = [0, 32], sizes = [8, 32], strides = [1, 1]} : vector<8x128xf32> to vector<8x32xf32>
    %91 = arith.negf %90 : vector<8x32xf32>
    %92 = math.exp %91 : vector<8x32xf32>
    %cst_35 = arith.constant 1.000000e+00 : f32
    %93 = vector.broadcast %cst_35 : f32 to vector<8x32xf32>
    %94 = arith.addf %93, %92 : vector<8x32xf32>
    %95 = arith.divf %93, %94 : vector<8x32xf32>
    %96 = vector.extract_strided_slice %83 {offsets = [0, 64], sizes = [8, 32], strides = [1, 1]} : vector<8x128xf32> to vector<8x32xf32>
    %97 = math.tanh %96 : vector<8x32xf32>
    %98 = vector.extract_strided_slice %83 {offsets = [0, 96], sizes = [8, 32], strides = [1, 1]} : vector<8x128xf32> to vector<8x32xf32>
    %99 = arith.negf %98 : vector<8x32xf32>
    %100 = math.exp %99 : vector<8x32xf32>
    %cst_36 = arith.constant 1.000000e+00 : f32
    %101 = vector.broadcast %cst_36 : f32 to vector<8x32xf32>
    %102 = arith.addf %101, %100 : vector<8x32xf32>
    %103 = arith.divf %101, %102 : vector<8x32xf32>
    %104 = arith.mulf %95, %70 : vector<8x32xf32>
    %105 = arith.mulf %89, %97 : vector<8x32xf32>
    %106 = arith.addf %104, %105 : vector<8x32xf32>
    %107 = math.tanh %106 : vector<8x32xf32>
    %108 = arith.mulf %103, %107 : vector<8x32xf32>
    %c0_37 = arith.constant 0 : index
    %109 = arith.index_cast %c2_i32 : i32 to index
    %c0_38 = arith.constant 0 : index
    %c0_39 = arith.constant 0 : index
    %110 = vector.load %arg4[%c0_37, %109, %c0_38, %c0_39] : memref<1x8x8x32xf32, #tpu.memory_space<vmem>>, vector<1x1x8x32xf32>
    %111 = vector.shape_cast %110 : vector<1x1x8x32xf32> to vector<8x32xf32>
    %112 = vector.shape_cast %108 : vector<8x32xf32> to vector<1x1x8x32xf32>
    tpu.vector_store %arg4[%c0_37, %109, %c0_38, %c0_39], %112 {strides = array<i32>} : memref<1x8x8x32xf32, #tpu.memory_space<vmem>>, vector<1x1x8x32xf32>,
    %c3_i32 = arith.constant 3 : i32
    %113 = arith.truncf %108 : vector<8x32xf32> to vector<8x32xbf16>
    %c0_40 = arith.constant 0 : index
    %c0_41 = arith.constant 0 : index
    %114 = vector.load %arg7[%c0_40, %c0_41] : memref<32x128xbf16, #tpu.memory_space<vmem>>, vector<32x128xbf16>
    %cst_42 = arith.constant dense<0.000000e+00> : vector<8x128xf32>
    %115 = tpu.matmul %113, %114, %cst_42 {dimension_numbers = #tpu.dot_dimension_numbers<[1], [0], [0], [1], [0, 0, 1, 1], [], []>} : vector<8x32xbf16>, vector<32x128xbf16>, vector<8x128xf32> -> vector<8x128xf32>
    %c0_43 = arith.constant 0 : index
    %116 = arith.index_cast %c3_i32 : i32 to index
    %c0_44 = arith.constant 0 : index
    %c0_45 = arith.constant 0 : index
    %117 = vector.load %arg2[%c0_43, %116, %c0_44, %c0_45] : memref<1x8x8x128xf32, #tpu.memory_space<vmem>>, vector<1x1x8x128xf32>
    %118 = vector.shape_cast %117 : vector<1x1x8x128xf32> to vector<8x128xf32>
    %119 = arith.addf %115, %118 : vector<8x128xf32>
    %120 = vector.extract_strided_slice %119 {offsets = [0, 0], sizes = [8, 32], strides = [1, 1]} : vector<8x128xf32> to vector<8x32xf32>
    %121 = arith.negf %120 : vector<8x32xf32>
    %122 = math.exp %121 : vector<8x32xf32>
    %cst_46 = arith.constant 1.000000e+00 : f32
    %123 = vector.broadcast %cst_46 : f32 to vector<8x32xf32>
    %124 = arith.addf %123, %122 : vector<8x32xf32>
    %125 = arith.divf %123, %124 : vector<8x32xf32>
    %126 = vector.extract_strided_slice %119 {offsets = [0, 32], sizes = [8, 32], strides = [1, 1]} : vector<8x128xf32> to vector<8x32xf32>
    %127 = arith.negf %126 : vector<8x32xf32>
    %128 = math.exp %127 : vector<8x32xf32>
    %cst_47 = arith.constant 1.000000e+00 : f32
    %129 = vector.broadcast %cst_47 : f32 to vector<8x32xf32>
    %130 = arith.addf %129, %128 : vector<8x32xf32>
    %131 = arith.divf %129, %130 : vector<8x32xf32>
    %132 = vector.extract_strided_slice %119 {offsets = [0, 64], sizes = [8, 32], strides = [1, 1]} : vector<8x128xf32> to vector<8x32xf32>
    %133 = math.tanh %132 : vector<8x32xf32>
    %134 = vector.extract_strided_slice %119 {offsets = [0, 96], sizes = [8, 32], strides = [1, 1]} : vector<8x128xf32> to vector<8x32xf32>
    %135 = arith.negf %134 : vector<8x32xf32>
    %136 = math.exp %135 : vector<8x32xf32>
    %cst_48 = arith.constant 1.000000e+00 : f32
    %137 = vector.broadcast %cst_48 : f32 to vector<8x32xf32>
    %138 = arith.addf %137, %136 : vector<8x32xf32>
    %139 = arith.divf %137, %138 : vector<8x32xf32>
    %140 = arith.mulf %131, %106 : vector<8x32xf32>
    %141 = arith.mulf %125, %133 : vector<8x32xf32>
    %142 = arith.addf %140, %141 : vector<8x32xf32>
    %143 = math.tanh %142 : vector<8x32xf32>
    %144 = arith.mulf %139, %143 : vector<8x32xf32>
    %c0_49 = arith.constant 0 : index
    %145 = arith.index_cast %c3_i32 : i32 to index
    %c0_50 = arith.constant 0 : index
    %c0_51 = arith.constant 0 : index
    %146 = vector.load %arg4[%c0_49, %145, %c0_50, %c0_51] : memref<1x8x8x32xf32, #tpu.memory_space<vmem>>, vector<1x1x8x32xf32>
    %147 = vector.shape_cast %146 : vector<1x1x8x32xf32> to vector<8x32xf32>
    %148 = vector.shape_cast %144 : vector<8x32xf32> to vector<1x1x8x32xf32>
    tpu.vector_store %arg4[%c0_49, %145, %c0_50, %c0_51], %148 {strides = array<i32>} : memref<1x8x8x32xf32, #tpu.memory_space<vmem>>, vector<1x1x8x32xf32>,
    %c4_i32 = arith.constant 4 : i32
    %149 = arith.truncf %144 : vector<8x32xf32> to vector<8x32xbf16>
    %c0_52 = arith.constant 0 : index
    %c0_53 = arith.constant 0 : index
    %150 = vector.load %arg7[%c0_52, %c0_53] : memref<32x128xbf16, #tpu.memory_space<vmem>>, vector<32x128xbf16>
    %cst_54 = arith.constant dense<0.000000e+00> : vector<8x128xf32>
    %151 = tpu.matmul %149, %150, %cst_54 {dimension_numbers = #tpu.dot_dimension_numbers<[1], [0], [0], [1], [0, 0, 1, 1], [], []>} : vector<8x32xbf16>, vector<32x128xbf16>, vector<8x128xf32> -> vector<8x128xf32>
    %c0_55 = arith.constant 0 : index
    %152 = arith.index_cast %c4_i32 : i32 to index
    %c0_56 = arith.constant 0 : index
    %c0_57 = arith.constant 0 : index
    %153 = vector.load %arg2[%c0_55, %152, %c0_56, %c0_57] : memref<1x8x8x128xf32, #tpu.memory_space<vmem>>, vector<1x1x8x128xf32>
    %154 = vector.shape_cast %153 : vector<1x1x8x128xf32> to vector<8x128xf32>
    %155 = arith.addf %151, %154 : vector<8x128xf32>
    %156 = vector.extract_strided_slice %155 {offsets = [0, 0], sizes = [8, 32], strides = [1, 1]} : vector<8x128xf32> to vector<8x32xf32>
    %157 = arith.negf %156 : vector<8x32xf32>
    %158 = math.exp %157 : vector<8x32xf32>
    %cst_58 = arith.constant 1.000000e+00 : f32
    %159 = vector.broadcast %cst_58 : f32 to vector<8x32xf32>
    %160 = arith.addf %159, %158 : vector<8x32xf32>
    %161 = arith.divf %159, %160 : vector<8x32xf32>
    %162 = vector.extract_strided_slice %155 {offsets = [0, 32], sizes = [8, 32], strides = [1, 1]} : vector<8x128xf32> to vector<8x32xf32>
    %163 = arith.negf %162 : vector<8x32xf32>
    %164 = math.exp %163 : vector<8x32xf32>
    %cst_59 = arith.constant 1.000000e+00 : f32
    %165 = vector.broadcast %cst_59 : f32 to vector<8x32xf32>
    %166 = arith.addf %165, %164 : vector<8x32xf32>
    %167 = arith.divf %165, %166 : vector<8x32xf32>
    %168 = vector.extract_strided_slice %155 {offsets = [0, 64], sizes = [8, 32], strides = [1, 1]} : vector<8x128xf32> to vector<8x32xf32>
    %169 = math.tanh %168 : vector<8x32xf32>
    %170 = vector.extract_strided_slice %155 {offsets = [0, 96], sizes = [8, 32], strides = [1, 1]} : vector<8x128xf32> to vector<8x32xf32>
    %171 = arith.negf %170 : vector<8x32xf32>
    %172 = math.exp %171 : vector<8x32xf32>
    %cst_60 = arith.constant 1.000000e+00 : f32
    %173 = vector.broadcast %cst_60 : f32 to vector<8x32xf32>
    %174 = arith.addf %173, %172 : vector<8x32xf32>
    %175 = arith.divf %173, %174 : vector<8x32xf32>
    %176 = arith.mulf %167, %142 : vector<8x32xf32>
    %177 = arith.mulf %161, %169 : vector<8x32xf32>
    %178 = arith.addf %176, %177 : vector<8x32xf32>
    %179 = math.tanh %178 : vector<8x32xf32>
    %180 = arith.mulf %175, %179 : vector<8x32xf32>
    %c0_61 = arith.constant 0 : index
    %181 = arith.index_cast %c4_i32 : i32 to index
    %c0_62 = arith.constant 0 : index
    %c0_63 = arith.constant 0 : index
    %182 = vector.load %arg4[%c0_61, %181, %c0_62, %c0_63] : memref<1x8x8x32xf32, #tpu.memory_space<vmem>>, vector<1x1x8x32xf32>
    %183 = vector.shape_cast %182 : vector<1x1x8x32xf32> to vector<8x32xf32>
    %184 = vector.shape_cast %180 : vector<8x32xf32> to vector<1x1x8x32xf32>
    tpu.vector_store %arg4[%c0_61, %181, %c0_62, %c0_63], %184 {strides = array<i32>} : memref<1x8x8x32xf32, #tpu.memory_space<vmem>>, vector<1x1x8x32xf32>,
    %c5_i32 = arith.constant 5 : i32
    %185 = arith.truncf %180 : vector<8x32xf32> to vector<8x32xbf16>
    %c0_64 = arith.constant 0 : index
    %c0_65 = arith.constant 0 : index
    %186 = vector.load %arg7[%c0_64, %c0_65] : memref<32x128xbf16, #tpu.memory_space<vmem>>, vector<32x128xbf16>
    %cst_66 = arith.constant dense<0.000000e+00> : vector<8x128xf32>
    %187 = tpu.matmul %185, %186, %cst_66 {dimension_numbers = #tpu.dot_dimension_numbers<[1], [0], [0], [1], [0, 0, 1, 1], [], []>} : vector<8x32xbf16>, vector<32x128xbf16>, vector<8x128xf32> -> vector<8x128xf32>
    %c0_67 = arith.constant 0 : index
    %188 = arith.index_cast %c5_i32 : i32 to index
    %c0_68 = arith.constant 0 : index
    %c0_69 = arith.constant 0 : index
    %189 = vector.load %arg2[%c0_67, %188, %c0_68, %c0_69] : memref<1x8x8x128xf32, #tpu.memory_space<vmem>>, vector<1x1x8x128xf32>
    %190 = vector.shape_cast %189 : vector<1x1x8x128xf32> to vector<8x128xf32>
    %191 = arith.addf %187, %190 : vector<8x128xf32>
    %192 = vector.extract_strided_slice %191 {offsets = [0, 0], sizes = [8, 32], strides = [1, 1]} : vector<8x128xf32> to vector<8x32xf32>
    %193 = arith.negf %192 : vector<8x32xf32>
    %194 = math.exp %193 : vector<8x32xf32>
    %cst_70 = arith.constant 1.000000e+00 : f32
    %195 = vector.broadcast %cst_70 : f32 to vector<8x32xf32>
    %196 = arith.addf %195, %194 : vector<8x32xf32>
    %197 = arith.divf %195, %196 : vector<8x32xf32>
    %198 = vector.extract_strided_slice %191 {offsets = [0, 32], sizes = [8, 32], strides = [1, 1]} : vector<8x128xf32> to vector<8x32xf32>
    %199 = arith.negf %198 : vector<8x32xf32>
    %200 = math.exp %199 : vector<8x32xf32>
    %cst_71 = arith.constant 1.000000e+00 : f32
    %201 = vector.broadcast %cst_71 : f32 to vector<8x32xf32>
    %202 = arith.addf %201, %200 : vector<8x32xf32>
    %203 = arith.divf %201, %202 : vector<8x32xf32>
    %204 = vector.extract_strided_slice %191 {offsets = [0, 64], sizes = [8, 32], strides = [1, 1]} : vector<8x128xf32> to vector<8x32xf32>
    %205 = math.tanh %204 : vector<8x32xf32>
    %206 = vector.extract_strided_slice %191 {offsets = [0, 96], sizes = [8, 32], strides = [1, 1]} : vector<8x128xf32> to vector<8x32xf32>
    %207 = arith.negf %206 : vector<8x32xf32>
    %208 = math.exp %207 : vector<8x32xf32>
    %cst_72 = arith.constant 1.000000e+00 : f32
    %209 = vector.broadcast %cst_72 : f32 to vector<8x32xf32>
    %210 = arith.addf %209, %208 : vector<8x32xf32>
    %211 = arith.divf %209, %210 : vector<8x32xf32>
    %212 = arith.mulf %203, %178 : vector<8x32xf32>
    %213 = arith.mulf %197, %205 : vector<8x32xf32>
    %214 = arith.addf %212, %213 : vector<8x32xf32>
    %215 = math.tanh %214 : vector<8x32xf32>
    %216 = arith.mulf %211, %215 : vector<8x32xf32>
    %c0_73 = arith.constant 0 : index
    %217 = arith.index_cast %c5_i32 : i32 to index
    %c0_74 = arith.constant 0 : index
    %c0_75 = arith.constant 0 : index
    %218 = vector.load %arg4[%c0_73, %217, %c0_74, %c0_75] : memref<1x8x8x32xf32, #tpu.memory_space<vmem>>, vector<1x1x8x32xf32>
    %219 = vector.shape_cast %218 : vector<1x1x8x32xf32> to vector<8x32xf32>
    %220 = vector.shape_cast %216 : vector<8x32xf32> to vector<1x1x8x32xf32>
    tpu.vector_store %arg4[%c0_73, %217, %c0_74, %c0_75], %220 {strides = array<i32>} : memref<1x8x8x32xf32, #tpu.memory_space<vmem>>, vector<1x1x8x32xf32>,
    %c6_i32 = arith.constant 6 : i32
    %221 = arith.truncf %216 : vector<8x32xf32> to vector<8x32xbf16>
    %c0_76 = arith.constant 0 : index
    %c0_77 = arith.constant 0 : index
    %222 = vector.load %arg7[%c0_76, %c0_77] : memref<32x128xbf16, #tpu.memory_space<vmem>>, vector<32x128xbf16>
    %cst_78 = arith.constant dense<0.000000e+00> : vector<8x128xf32>
    %223 = tpu.matmul %221, %222, %cst_78 {dimension_numbers = #tpu.dot_dimension_numbers<[1], [0], [0], [1], [0, 0, 1, 1], [], []>} : vector<8x32xbf16>, vector<32x128xbf16>, vector<8x128xf32> -> vector<8x128xf32>
    %c0_79 = arith.constant 0 : index
    %224 = arith.index_cast %c6_i32 : i32 to index
    %c0_80 = arith.constant 0 : index
    %c0_81 = arith.constant 0 : index
    %225 = vector.load %arg2[%c0_79, %224, %c0_80, %c0_81] : memref<1x8x8x128xf32, #tpu.memory_space<vmem>>, vector<1x1x8x128xf32>
    %226 = vector.shape_cast %225 : vector<1x1x8x128xf32> to vector<8x128xf32>
    %227 = arith.addf %223, %226 : vector<8x128xf32>
    %228 = vector.extract_strided_slice %227 {offsets = [0, 0], sizes = [8, 32], strides = [1, 1]} : vector<8x128xf32> to vector<8x32xf32>
    %229 = arith.negf %228 : vector<8x32xf32>
    %230 = math.exp %229 : vector<8x32xf32>
    %cst_82 = arith.constant 1.000000e+00 : f32
    %231 = vector.broadcast %cst_82 : f32 to vector<8x32xf32>
    %232 = arith.addf %231, %230 : vector<8x32xf32>
    %233 = arith.divf %231, %232 : vector<8x32xf32>
    %234 = vector.extract_strided_slice %227 {offsets = [0, 32], sizes = [8, 32], strides = [1, 1]} : vector<8x128xf32> to vector<8x32xf32>
    %235 = arith.negf %234 : vector<8x32xf32>
    %236 = math.exp %235 : vector<8x32xf32>
    %cst_83 = arith.constant 1.000000e+00 : f32
    %237 = vector.broadcast %cst_83 : f32 to vector<8x32xf32>
    %238 = arith.addf %237, %236 : vector<8x32xf32>
    %239 = arith.divf %237, %238 : vector<8x32xf32>
    %240 = vector.extract_strided_slice %227 {offsets = [0, 64], sizes = [8, 32], strides = [1, 1]} : vector<8x128xf32> to vector<8x32xf32>
    %241 = math.tanh %240 : vector<8x32xf32>
    %242 = vector.extract_strided_slice %227 {offsets = [0, 96], sizes = [8, 32], strides = [1, 1]} : vector<8x128xf32> to vector<8x32xf32>
    %243 = arith.negf %242 : vector<8x32xf32>
    %244 = math.exp %243 : vector<8x32xf32>
    %cst_84 = arith.constant 1.000000e+00 : f32
    %245 = vector.broadcast %cst_84 : f32 to vector<8x32xf32>
    %246 = arith.addf %245, %244 : vector<8x32xf32>
    %247 = arith.divf %245, %246 : vector<8x32xf32>
    %248 = arith.mulf %239, %214 : vector<8x32xf32>
    %249 = arith.mulf %233, %241 : vector<8x32xf32>
    %250 = arith.addf %248, %249 : vector<8x32xf32>
    %251 = math.tanh %250 : vector<8x32xf32>
    %252 = arith.mulf %247, %251 : vector<8x32xf32>
    %c0_85 = arith.constant 0 : index
    %253 = arith.index_cast %c6_i32 : i32 to index
    %c0_86 = arith.constant 0 : index
    %c0_87 = arith.constant 0 : index
    %254 = vector.load %arg4[%c0_85, %253, %c0_86, %c0_87] : memref<1x8x8x32xf32, #tpu.memory_space<vmem>>, vector<1x1x8x32xf32>
    %255 = vector.shape_cast %254 : vector<1x1x8x32xf32> to vector<8x32xf32>
    %256 = vector.shape_cast %252 : vector<8x32xf32> to vector<1x1x8x32xf32>
    tpu.vector_store %arg4[%c0_85, %253, %c0_86, %c0_87], %256 {strides = array<i32>} : memref<1x8x8x32xf32, #tpu.memory_space<vmem>>, vector<1x1x8x32xf32>,
    %c7_i32 = arith.constant 7 : i32
    %257 = arith.truncf %252 : vector<8x32xf32> to vector<8x32xbf16>
    %c0_88 = arith.constant 0 : index
    %c0_89 = arith.constant 0 : index
    %258 = vector.load %arg7[%c0_88, %c0_89] : memref<32x128xbf16, #tpu.memory_space<vmem>>, vector<32x128xbf16>
    %cst_90 = arith.constant dense<0.000000e+00> : vector<8x128xf32>
    %259 = tpu.matmul %257, %258, %cst_90 {dimension_numbers = #tpu.dot_dimension_numbers<[1], [0], [0], [1], [0, 0, 1, 1], [], []>} : vector<8x32xbf16>, vector<32x128xbf16>, vector<8x128xf32> -> vector<8x128xf32>
    %c0_91 = arith.constant 0 : index
    %260 = arith.index_cast %c7_i32 : i32 to index
    %c0_92 = arith.constant 0 : index
    %c0_93 = arith.constant 0 : index
    %261 = vector.load %arg2[%c0_91, %260, %c0_92, %c0_93] : memref<1x8x8x128xf32, #tpu.memory_space<vmem>>, vector<1x1x8x128xf32>
    %262 = vector.shape_cast %261 : vector<1x1x8x128xf32> to vector<8x128xf32>
    %263 = arith.addf %259, %262 : vector<8x128xf32>
    %264 = vector.extract_strided_slice %263 {offsets = [0, 0], sizes = [8, 32], strides = [1, 1]} : vector<8x128xf32> to vector<8x32xf32>
    %265 = arith.negf %264 : vector<8x32xf32>
    %266 = math.exp %265 : vector<8x32xf32>
    %cst_94 = arith.constant 1.000000e+00 : f32
    %267 = vector.broadcast %cst_94 : f32 to vector<8x32xf32>
    %268 = arith.addf %267, %266 : vector<8x32xf32>
    %269 = arith.divf %267, %268 : vector<8x32xf32>
    %270 = vector.extract_strided_slice %263 {offsets = [0, 32], sizes = [8, 32], strides = [1, 1]} : vector<8x128xf32> to vector<8x32xf32>
    %271 = arith.negf %270 : vector<8x32xf32>
    %272 = math.exp %271 : vector<8x32xf32>
    %cst_95 = arith.constant 1.000000e+00 : f32
    %273 = vector.broadcast %cst_95 : f32 to vector<8x32xf32>
    %274 = arith.addf %273, %272 : vector<8x32xf32>
    %275 = arith.divf %273, %274 : vector<8x32xf32>
    %276 = vector.extract_strided_slice %263 {offsets = [0, 64], sizes = [8, 32], strides = [1, 1]} : vector<8x128xf32> to vector<8x32xf32>
    %277 = math.tanh %276 : vector<8x32xf32>
    %278 = vector.extract_strided_slice %263 {offsets = [0, 96], sizes = [8, 32], strides = [1, 1]} : vector<8x128xf32> to vector<8x32xf32>
    %279 = arith.negf %278 : vector<8x32xf32>
    %280 = math.exp %279 : vector<8x32xf32>
    %cst_96 = arith.constant 1.000000e+00 : f32
    %281 = vector.broadcast %cst_96 : f32 to vector<8x32xf32>
    %282 = arith.addf %281, %280 : vector<8x32xf32>
    %283 = arith.divf %281, %282 : vector<8x32xf32>
    %284 = arith.mulf %275, %250 : vector<8x32xf32>
    %285 = arith.mulf %269, %277 : vector<8x32xf32>
    %286 = arith.addf %284, %285 : vector<8x32xf32>
    %287 = math.tanh %286 : vector<8x32xf32>
    %288 = arith.mulf %283, %287 : vector<8x32xf32>
    %c0_97 = arith.constant 0 : index
    %289 = arith.index_cast %c7_i32 : i32 to index
    %c0_98 = arith.constant 0 : index
    %c0_99 = arith.constant 0 : index
    %290 = vector.load %arg4[%c0_97, %289, %c0_98, %c0_99] : memref<1x8x8x32xf32, #tpu.memory_space<vmem>>, vector<1x1x8x32xf32>
    %291 = vector.shape_cast %290 : vector<1x1x8x32xf32> to vector<8x32xf32>
    %292 = vector.shape_cast %288 : vector<8x32xf32> to vector<1x1x8x32xf32>
    tpu.vector_store %arg4[%c0_97, %289, %c0_98, %c0_99], %292 {strides = array<i32>} : memref<1x8x8x32xf32, #tpu.memory_space<vmem>>, vector<1x1x8x32xf32>,
    %c8_i32 = arith.constant 8 : i32
    %c0_100 = arith.constant 0 : index
    %c0_101 = arith.constant 0 : index
    %293 = vector.load %arg8[%c0_100, %c0_101] : memref<8x32xf32, #tpu.memory_space<vmem>>, vector<8x32xf32>
    tpu.vector_store %arg8[%c0_100, %c0_101], %288 {strides = array<i32>} : memref<8x32xf32, #tpu.memory_space<vmem>>, vector<8x32xf32>,
    %c0_102 = arith.constant 0 : index
    %c0_103 = arith.constant 0 : index
    %294 = vector.load %arg9[%c0_102, %c0_103] : memref<8x32xf32, #tpu.memory_space<vmem>>, vector<8x32xf32>
    tpu.vector_store %arg9[%c0_102, %c0_103], %286 {strides = array<i32>} : memref<8x32xf32, #tpu.memory_space<vmem>>, vector<8x32xf32>,
    %c0_i32_104 = arith.constant 0 : i32
    %295 = arith.cmpi eq, %arg1, %c0_i32_104 : i32
    %296 = arith.extui %295 : i1 to i32
    %c0_i32_105 = arith.constant 0 : i32
    %297 = arith.cmpi ne, %296, %c0_i32_105 : i32
    scf.if %297 {
      %c0_106 = arith.constant 0 : index
      %c0_107 = arith.constant 0 : index
      %c0_108 = arith.constant 0 : index
      %298 = vector.load %arg5[%c0_106, %c0_107, %c0_108] : memref<1x8x32xf32, #tpu.memory_space<vmem>>, vector<1x8x32xf32>
      %299 = vector.shape_cast %298 : vector<1x8x32xf32> to vector<8x32xf32>
      %300 = vector.shape_cast %288 : vector<8x32xf32> to vector<1x8x32xf32>
      tpu.vector_store %arg5[%c0_106, %c0_107, %c0_108], %300 {strides = array<i32>} : memref<1x8x32xf32, #tpu.memory_space<vmem>>, vector<1x8x32xf32>,
      %c0_109 = arith.constant 0 : index
      %c0_110 = arith.constant 0 : index
      %c0_111 = arith.constant 0 : index
      %301 = vector.load %arg6[%c0_109, %c0_110, %c0_111] : memref<1x8x32xf32, #tpu.memory_space<vmem>>, vector<1x8x32xf32>
      %302 = vector.shape_cast %301 : vector<1x8x32xf32> to vector<8x32xf32>
      %303 = vector.shape_cast %286 : vector<8x32xf32> to vector<1x8x32xf32>
      tpu.vector_store %arg6[%c0_109, %c0_110, %c0_111], %303 {strides = array<i32>} : memref<1x8x32xf32, #tpu.memory_space<vmem>>, vector<1x8x32xf32>,
    } else {
    }
    return
  }
  func.func @transform_0(%arg0: i32, %arg1: i32) -> (i32, i32, i32, i32) {
    %c0_i32 = arith.constant 0 : i32
    %c0_i32_0 = arith.constant 0 : i32
    %c0_i32_1 = arith.constant 0 : i32
    return %arg0, %arg1, %c0_i32, %c0_i32_0 : i32, i32, i32, i32
  }
  func.func @transform_2(%arg0: i32, %arg1: i32) -> (i32, i32, i32, i32) {
    %c0_i32 = arith.constant 0 : i32
    %c0_i32_0 = arith.constant 0 : i32
    %c0_i32_1 = arith.constant 0 : i32
    return %arg0, %arg1, %c0_i32, %c0_i32_0 : i32, i32, i32, i32
  }
  func.func @transform_3(%arg0: i32, %arg1: i32) -> (i32, i32, i32) {
    %c0_i32 = arith.constant 0 : i32
    %c0_i32_0 = arith.constant 0 : i32
    %c0_i32_1 = arith.constant 0 : i32
    return %arg0, %c0_i32, %c0_i32_0 : i32, i32, i32
  }
  func.func @transform_4(%arg0: i32, %arg1: i32) -> (i32, i32, i32) {
    %c0_i32 = arith.constant 0 : i32
    %c0_i32_0 = arith.constant 0 : i32
    %c0_i32_1 = arith.constant 0 : i32
    return %arg0, %c0_i32, %c0_i32_0 : i32, i32, i32
  }
}

</mosaic_0001>

<bundles_post_ra>
// kernel: tpu_custom_call.1
= control target key start
LH: loop header
LB: loop body
LE: loop exit
PB: predicated region body
PF: predicated region fallthrough
CT: control target
= control target key end

     0   :  { %s2155_s0 = inlined_call_operand.hbm [shape: f32[2,8,8,128], index: 0, kind: input, shape index: {}]   ;;  %s2156_s1 = inlined_call_operand.hbm [shape: bf16[2,32,128], index: 1, kind: input, shape index: {}]   ;;  %s2157_s2 = inlined_call_operand.hbm [shape: f32[2,8,8,32], index: 2, kind: output, shape index: {0}]   ;;  %s2158_s3 = inlined_call_operand.hbm [shape: f32[2,8,32], index: 3, kind: output, shape index: {1}]   ;;  %s2159_s4 = inlined_call_operand.hbm [shape: f32[2,8,32], index: 4, kind: output, shape index: {2}]  }
   0x1   :  { %2163 = sst [smem:[#allocation23_spill]] %s2155_s0 }
   0x2   :  { %10 = vsyncpa [#allocation6], 0 }
   0x3   :  { %12 = vsyncpa [#allocation6 + $0x1], 0 }
   0x4   :  { %13 = vsyncpa [#allocation7], 0 }
   0x5   :  { %15 = vsyncpa [#allocation7 + $0x1], 0 }
   0x6   :  { %16 = vsyncpa [#allocation10], 0 }
   0x7   :  { %18 = vsyncpa [#allocation10 + $0x1], 0  ;;  %s1780_s15 = smov 0   ;;  %s1782_s16 = smov 0  }
   0x8   :  { %s1784_s17 = smov 0   ;;  %s1786_s18 = smov 0  }
   0x9   :  { %s1788_s19 = smov 0   ;;  %s1790_s20 = smov 0  }
   0xa LB: > { %2164 = sst [smem:[#allocation21_spill]] %s1735_s19  ;;  %s1811_s21 = sadd.s32 4294967295, %s1739_s20   ;;  %s1739_s20 = sphi %s1790_s20, %s24_s20   ;;  %s1735_s19 = sphi %s1788_s19, %s2175_s19   ;;  %s1731_s18 = sphi %s1786_s18, %s2174_s18   ;;  %s1727_s17 = sphi %s1784_s17, %s2178_s17   ;;  %s1723_s16 = sphi %s1782_s16, %s2177_s16   ;;  %s1719_s15 = sphi %s1780_s15, %s2176_s15  }
   0xb   : > { %s2160_s22 = sadd.s32 4294967294, %s1739_s20   ;;  %s36_s23 = sadd.s32 1, %s1735_s19 }
   0xc   : > { %s45_s24 = sadd.s32 1, %s1727_s17  ;;  %p38_p0 = scmp.ge.s32.totalorder %s36_s23, 2 }
   0xd   : > { %p52_p1 = scmp.ne.s32.totalorder %s1727_s17, %s1723_s16  ;;  %p53_p2 = scmp.eq.s32.totalorder %s1739_s20, 0 }
   0xe   : > { %p58_p3 = scmp.ne.s32.totalorder %s1723_s16, %s1719_s15  ;;  %s2180_s23 = smov (%p38_p0, %s36_s23), 0 }
   0xf   : > { %2165 = sst [smem:[#allocation22_spill]] %s2180_s23  ;;  %p1823_p4 = por %p53_p2, %p52_p1 }
  0x10   : > { %p59_p5 = scmp.eq.s32.totalorder %s1811_s21, 0  ;;  %s40_s26 = ssub.s32 %s1735_s19, %s2180_s23 }
  0x11   : > { %p84_p6 = scmp.eq.s32.totalorder %s1811_s21, 1  ;;  %p43_p7 = scmp.eq.s32.totalorder %s40_s26, 0 }
  0x12   : > { %p1831_p8 = por %p59_p5, %p58_p3  ;;  %p90_p10 = scmp.eq.s32.totalorder %s2160_s22, 1 }
  0x13   : > { %p1835_p9 = por %p84_p6, %p52_p1  ;;  %p1411_p13 = scmp.lt.s32.totalorder %s1739_s20, 2 }
  0x14   : > { %s1842_s29 = scalar_select %p43_p7, %s1727_s17, %s45_s24  }
  0x15   : > { %p1844_p11 = por %p90_p10, %p58_p3  ;;  %s162_s5 = sand.u32 1, %s1727_s17  }
  0x16   : > { %s1233_s6 = sshll.u32 %s162_s5, 6  ;;  %s1298_s7 = sshll.u32 %s1735_s19, 10 }
  0x17   : > { %s2170_s0 = sld [smem:[#allocation23_spill]]  ;;  %s166_s11 = scalar_lea.vmem [#allocation5], %s1233_s6 }
  0x18   : > { %s175_s12 = sshll.u32 %s166_s11, 4  ;;  %p1857_p0 = pnand %p1411_p13, %p1823_p4  ;;  %s176_s12 = int_to_ptr.vmem [resolvable:$true] %s175_s12 }
  0x19   : > { %p1236_p1 = scmp.ge.s32.totalorder %s1739_s20, 1  ;;  %s163_s14 = scalar_lea.sflag [#allocation6], %s162_s5 }
  0x1a   : > { %p1553_p2 = pneg %p1857_p0  ;;  %s1564_s24 = scalar_lea.vmem %s176_s12, 1024 }
  0x1b   : > { %p1565_p3 = scmp.ne.s32.totalorder %s176_s12, %s1564_s24  ;;  %s1741_s26 = smov [#allocation5]  }
  0x1c   : > { %s1569_s8 = sshll.u32 %s1741_s26, 4  ;;  %s1570_s8 = int_to_ptr.vmem [resolvable:$false] %s1569_s8 }
  0x1d   : > { %s174_s10 = scalar_lea.hbm %s2170_s0, %s1298_s7  ;;  %p1567_p5 = pnand %p1565_p3, %p1553_p2 }
  0x1e   : > { %s1571_s6 = scalar_lea.vmem %s1570_s8, 2048  ;;  %p1572_p7 = scmp.lt.s32.totalorder %s176_s12, %s1570_s8 }
  0x1f   : > { %p1568_p6 = pneg %p1567_p5  ;;  %p1573_p10 = scmp.lt.s32.totalorder %s1571_s6, %s1564_s24 }
  0x21   : > { %p1574_p12 = por %p1573_p10, %p1572_p7 }
  0x23   : > { %p1575_p4 = pnand %p1574_p12, %p1568_p6 }
  0x25   : > { %1578 = shalt.err (!%p1575_p4)
}
  0x26   : > { %s1742_s25 = smov 128   ;;  %s1743_s5 = smov 8  }
  0x27   : > { %1400 = dma.hbm_to_vmem [thread:$0]  (!%p1857_p0), %s174_s10, 1024, %s176_s12, %s163_s14, %s1742_s25, %s1742_s25, %s1743_s5  }
  0x28   : > { %p183_p13 = scmp.lt.s32.totalorder %s1739_s20, 3 }
  0x2a   : > { %p184_p2 = pnand %p1236_p1, %p183_p13 }
  0x2b   : > { %s1870_s7 = sand.u32 (!%p184_p2), 1, %s1723_s16  }
  0x2c   : > { %187 = sbr.rel (%p184_p2) target bundleno = 5675 (0x162b), region = 24  ;;  %s1237_s9 = sshll.u32 (!%p184_p2), %s1870_s7, 6 }
  0x2d   : > { %s190_s11 = scalar_lea.sflag (!%p184_p2), [#allocation6], %s1870_s7  ;;  %s1874_s24 = scalar_lea.vmem (!%p184_p2), [#allocation5], %s1237_s9 }
  0x31   : > { %1704 = dma.done.wait (%p1831_p8), %s190_s11, 1024  }
  0x32   : > { %1706 = vsyncadd (%p1831_p8), %s190_s11, 4294966272  ;;  %s1239_s10 = sshll.u32 %s1870_s7, 3  ;;  %s1881_s12 = scalar_lea.vmem [#allocation8], %s1237_s9 }
  0x33   : > { %s1883_s13 = scalar_lea.vmem [#allocation9], %s1239_s10  ;;  %s1885_s14 = scalar_lea.vmem [#allocation11], %s1239_s10 }
  0x34   : > { %s1299_s26 = sshll.u32 %s1731_s18, 8  ;;  %s1744_s5 = smov [#allocation2]  }
  0x35   : > { %s235_s25 = scalar_lea.hbm %s2156_s1, %s1299_s26  ;;  %s243_s22 = sshll.u32 %s1744_s5, 4  ;;  %s244_s22 = int_to_ptr.vmem [resolvable:$true] %s243_s22 }
  0x36   : > { %s1579_s0 = scalar_lea.hbm %s235_s25, 256  ;;  %s1581_s9 = scalar_lea.hbm %s2156_s1, 512 }
  0x37   : > { %p1580_p12 = scmp.ne.s32.totalorder %s235_s25, %s1579_s0  ;;  %p1582_p8 = scmp.lt.s32.totalorder %s235_s25, %s2156_s1 }
  0x38   : > { %p1583_p0 = scmp.lt.s32.totalorder %s1581_s9, %s1579_s0 }
  0x3a   : > { %p1584_p1 = por %p1583_p0, %p1582_p8 }
  0x3c   : > { %p1585_p3 = pnand %p1584_p1, %p1580_p12 }
  0x3e   : > { %1588 = shalt.err (!%p1585_p3)  }
  0x3f   : > { %s1589_s10 = scalar_lea.vmem %s244_s22, 256  ;;  %p1594_p6 = scmp.lt.s32.totalorder %s244_s22, %s244_s22 }
  0x40   : > { %p1590_p5 = scmp.ne.s32.totalorder %s244_s22, %s1589_s10  ;;  %p1595_p7 = scmp.lt.s32.totalorder %s1589_s10, %s1589_s10 }
  0x42   : > { %p1596_p10 = por %p1595_p7, %p1594_p6 }
  0x44   : > { %p1597_p4 = pnand %p1596_p10, %p1590_p5 }
  0x46   : > { %1600 = shalt.err (!%p1597_p4)  }
  0x47   : > { %246 = dma.hbm_to_vmem [thread:$0]  %s235_s25, 256, %s244_s22, [#allocation12] }
  0x48   : > { %1707 = dma.done.wait [#allocation12], 256 }
  0x49   : > { %1708 = vsyncadd [#allocation12], 4294967040  ;;  %v1471_v0 = vld [vmem:[#allocation2 + $0x8] sm:$0xff]   ;;  %v1745_v1 = vmov 0.0   ;;  %v1472_v2 = vld [vmem:[#allocation2] sm:$0xff]   ;;  %vm1746_vm0 = vmmov 0  }
  0x4a   : > { %1325 = vmatprep.subr.bf16.mxu0 %v1745_v1  ;;  %1333 = vmatprep.subr.bf16.mxu1 %v1745_v1  ;;  %vm251_vm1 = vcmask 261120   ;;  %v261_v5 = vld [vmem:[%s1874_s24] sm:$0xff]  ;;  %s1747_s0 = smov 64   ;;  %s1748_s19 = smov 32   ;;  %v1473_v23 = vld [vmem:[#allocation2 + $0x8] sm:$0xff]   ;;  %v1253_v53 = vld [vmem:[%s1874_s24 + $0x10] sm:$0xff] }
  0x4b   : > { %1326 = vmatpush3.bf16.msra.mxu0 %v1471_v0  ;;  %1329 = vmatprep.mubr.msk.bf16.mxu0 %vm1746_vm0, %v1745_v1  ;;  %252 = vst.msk [vmem:[#allocation3] sm:$0xff] %vm251_vm1, %v1745_v1  ;;  %253 = vst.msk [vmem:[#allocation4] sm:$0xff] %vm251_vm1, %v1745_v1  ;;  %v1474_v24 = vld [vmem:[#allocation2] sm:$0xff]   ;;  %v1247_v30 = vld [vmem:[%s1874_s24 + $0x8] sm:$0xff]  ;;  %s1749_s22 = smov 96   ;;  %s1032_s23 = sand.u32 1, %s1811_s21  }
  0x4c   : > { %1327 = vmatprep.subr.bf16.mxu0 %v1745_v1  ;;  %1337 = vmatprep.mubr.msk.bf16.mxu1 %vm1746_vm0, %v1745_v1  ;;  %v1475_v46 = vld [vmem:[#allocation2 + $0x8] sm:$0xff]   ;;  %v1476_v47 = vld [vmem:[#allocation2] sm:$0xff]   ;;  %s1069_s26 = sshll.u32 %s1883_s13, 4  ;;  %s1300_s8 = sshll.u32 %s1731_s18, 10  ;;  %s2038_s26 = int_to_ptr.vmem [resolvable:$true] %s1069_s26 }
  0x4d   : > { %1334 = vmatpush3.bf16.msra.mxu1 %v1473_v23  ;;  %s1053_s6 = sshll.u32 %s1881_s12, 4  ;;  %s1082_s11 = sshll.u32 %s1885_s14, 4  ;;  %s2046_s6 = int_to_ptr.vmem [resolvable:$true] %s1053_s6  ;;  %s2058_s11 = int_to_ptr.vmem [resolvable:$true] %s1082_s11 }
  0x4e   : > { %1335 = vmatprep.subr.bf16.mxu1 %v1745_v1  ;;  %s1750_s25 = smov [#allocation9]  }
  0x4f   : > { %1328 = vmatpush3.bf16.msra.mxu0 %v1472_v2 }
  0x50   : > { %1341 = vmatprep.subr.bf16.mxu0 %v1745_v1 }
  0x51   : > { %1336 = vmatpush3.bf16.msra.mxu1 %v1474_v24 }
  0x52   : > { %v254_v3 = vld [vmem:[#allocation3] sm:$0xff]  ;;  %v255_v12 = vld [vmem:[#allocation4] sm:$0xff]  ;;  %1349 = vmatprep.subr.bf16.mxu1 %v1745_v1 }
  0x53   : > { %v256_v4 = vpack.c.bf16 %v254_v3, %v254_v3 }
  0x55   : > { %1330 = vmatmul.mubr.msk.bf16.vlgmr.msra.gmra.mxu0 %vm251_vm1, %v256_v4 }
  0x56   : > { %1345 = vmatprep.mubr.msk.bf16.mxu0 %vm1746_vm0, %v1745_v1  ;;  %1342 = vmatpush3.bf16.msra.mxu0 %v1475_v46 }
  0x57   : > { %1343 = vmatprep.subr.bf16.mxu0 %v1745_v1 }
  0x5a   : > { %1344 = vmatpush3.bf16.msra.mxu0 %v1476_v47 }
  0x5b   : > { %1357 = vmatprep.subr.bf16.mxu0 %v1745_v1 }
 0x115   : > { %v312_v6 = vpop.f32.mrf.mxu0 }
 0x116   : > { %v313_v7 = vadd.f32 %v312_v6, %v261_v5  ;;  %v1477_v6 = vld [vmem:[#allocation2 + $0x8] sm:$0xff]  }
 0x117   : > { %v1331_v8 = vpop.f32.mrf.mxu0 }
 0x118   : > { %1487 = vtanh.f32 %v313_v7  ;;  %v1246_v13 = vmul.f32 -1.442695, %v313_v7  ;;  %v1478_v7 = vld [vmem:[#allocation2] sm:$0xff]  }
 0x119   : > { %v315_v9 = vpop.f32.mrf.mxu0 }
 0x11a   : > { %1489 = vpow2.f32 %v1246_v13  ;;  %v1259_v13 = vld [vmem:[%s1874_s24 + $0x18] sm:$0xff] }
 0x11b   : > { %v1332_v10 = vpop.f32.mrf.mxu0 }
 0x125   : > { %v1488_v11 = vpop.eup %1487 }
 0x126   : > { %331 = vrot.lane.b32.xlu0 %v1488_v11, %s1747_s0 }
 0x127   : > { %v1490_v14 = vpop.eup %1489 }
 0x128   : > { %v321_v15 = vadd.f32 1.0, %v1490_v14 }
 0x12a   : > { %326 = vrot.lane.b32.xlu0 %v255_v12, %s1748_s19  ;;  %1491 = vrcp.f32 %v321_v15 }
 0x137   : > { %v1492_v16 = vpop.eup %1491 }
 0x198   : > { %v332_v17 = vpop.permute.xlu0 %331 }
 0x199   : > { %v334_v18 = vmul.f32 %v1492_v16, %v332_v17 }
 0x19b   : > { %336 = vrot.lane.b32.xlu1 %v334_v18, %s1748_s19 }
 0x19c   : > { %v327_v19 = vpop.permute.xlu0 %326 }
 0x19d   : > { %v329_v20 = vmul.f32 %v1492_v16, %v327_v19 }
 0x20d   : > { %v337_v21 = vpop.permute.xlu1 %336 }
 0x20e   : > { %v339_v22 = vadd.f32 %v337_v21, %v329_v20 }
 0x210   : > { %1493 = vtanh.f32 %v339_v22 }
 0x21d   : > { %v1494_v25 = vpop.eup %1493 }
 0x21e   : > { %342 = vrot.lane.b32.xlu1 %v1494_v25, %s1747_s0 }
 0x290   : > { %v343_v26 = vpop.permute.xlu1 %342 }
 0x291   : > { %v1919_v27 = vmul.f32 %v1492_v16, %v343_v26 }
 0x293   : > { %v351_v28 = vpack.c.bf16 %v1919_v27, %v1919_v27 }
 0x295   : > { %359 = vrot.lane.b32.xlu0 %v351_v28, %s1748_s19 }
 0x307   : > { %v360_v29 = vpop.permute.xlu0 %359 }
 0x308   : > { %1338 = vmatmul.mubr.msk.bf16.vlgmr.msra.gmra.mxu1 %vm251_vm1, %v360_v29 }
 0x309   : > { %1353 = vmatprep.mubr.msk.bf16.mxu1 %vm1746_vm0, %v1745_v1  ;;  %1350 = vmatpush3.bf16.msra.mxu1 %v1477_v6 }
 0x30a   : > { %1351 = vmatprep.subr.bf16.mxu1 %v1745_v1 }
 0x30d   : > { %1352 = vmatpush3.bf16.msra.mxu1 %v1478_v7 }
 0x30e   : > { %1365 = vmatprep.subr.bf16.mxu1 %v1745_v1 }
 0x3c8   : > { %v410_v31 = vpop.f32.mrf.mxu1 }
 0x3c9   : > { %v411_v32 = vadd.f32 %v1247_v30, %v410_v31  ;;  %v1479_v30 = vld [vmem:[#allocation2 + $0x8] sm:$0xff]   ;;  %v1480_v31 = vld [vmem:[#allocation2] sm:$0xff]  }
 0x3ca   : > { %v1339_v33 = vpop.f32.mrf.mxu1 }
 0x3cb   : > { %1495 = vtanh.f32 %v411_v32  ;;  %v1251_v37 = vmul.f32 -1.442695, %v411_v32 }
 0x3cc   : > { %v413_v34 = vpop.f32.mrf.mxu1 }
 0x3cd   : > { %1497 = vpow2.f32 %v1251_v37  ;;  %v1265_v37 = vld [vmem:[%s1874_s24 + $0x20] sm:$0xff] }
 0x3ce   : > { %v1340_v35 = vpop.f32.mrf.mxu1 }
 0x3d8   : > { %v1496_v36 = vpop.eup %1495 }
 0x3d9   : > { %425 = vrot.lane.b32.xlu1 %v1496_v36, %s1747_s0 }
 0x3da   : > { %v1498_v38 = vpop.eup %1497 }
 0x3db   : > { %v419_v39 = vadd.f32 1.0, %v1498_v38 }
 0x3dd   : > { %1499 = vrcp.f32 %v419_v39 }
 0x3ea   : > { %v1500_v40 = vpop.eup %1499 }
 0x3eb   : > { %v423_v43 = vmul.f32 %v1500_v40, %v339_v22 }
 0x44b   : > { %v426_v41 = vpop.permute.xlu1 %425 }
 0x44c   : > { %v428_v42 = vmul.f32 %v1500_v40, %v426_v41 }
 0x44e   : > { %430 = vrot.lane.b32.xlu0 %v428_v42, %s1748_s19 }
 0x4c0   : > { %v431_v44 = vpop.permute.xlu0 %430 }
 0x4c1   : > { %v433_v45 = vadd.f32 %v431_v44, %v423_v43 }
 0x4c3   : > { %1501 = vtanh.f32 %v433_v45 }
 0x4d0   : > { %v1502_v48 = vpop.eup %1501 }
 0x4d1   : > { %436 = vrot.lane.b32.xlu1 %v1502_v48, %s1747_s0 }
 0x543   : > { %v437_v49 = vpop.permute.xlu1 %436 }
 0x544   : > { %v1933_v50 = vmul.f32 %v1500_v40, %v437_v49 }
 0x546   : > { %v446_v51 = vpack.c.bf16 %v1933_v50, %v1933_v50 }
 0x548   : > { %454 = vrot.lane.b32.xlu0 %v446_v51, %s1748_s19 }
 0x5ba   : > { %v455_v52 = vpop.permute.xlu0 %454 }
 0x5bb   : > { %1346 = vmatmul.mubr.msk.bf16.vlgmr.msra.gmra.mxu0 %vm251_vm1, %v455_v52 }
 0x5bc   : > { %1361 = vmatprep.mubr.msk.bf16.mxu0 %vm1746_vm0, %v1745_v1  ;;  %1358 = vmatpush3.bf16.msra.mxu0 %v1479_v30 }
 0x5bd   : > { %1359 = vmatprep.subr.bf16.mxu0 %v1745_v1 }
 0x5c0   : > { %1360 = vmatpush3.bf16.msra.mxu0 %v1480_v31 }
 0x5c1   : > { %1373 = vmatprep.subr.bf16.mxu0 %v1745_v1 }
 0x67b   : > { %v505_v54 = vpop.f32.mrf.mxu0 }
 0x67c   : > { %v506_v55 = vadd.f32 %v1253_v53, %v505_v54  ;;  %v1481_v54 = vld [vmem:[#allocation2 + $0x8] sm:$0xff]  }
 0x67d   : > { %v1347_v56 = vpop.f32.mrf.mxu0 }
 0x67e   : > { %1503 = vtanh.f32 %v506_v55  ;;  %v1257_v60 = vmul.f32 -1.442695, %v506_v55  ;;  %v1482_v55 = vld [vmem:[#allocation2] sm:$0xff]  }
 0x67f   : > { %v508_v57 = vpop.f32.mrf.mxu0 }
 0x680   : > { %1505 = vpow2.f32 %v1257_v60 }
 0x681   : > { %v1348_v58 = vpop.f32.mrf.mxu0 }
 0x68b   : > { %v1504_v59 = vpop.eup %1503 }
 0x68c   : > { %520 = vrot.lane.b32.xlu1 %v1504_v59, %s1747_s0 }
 0x68d   : > { %v1506_v61 = vpop.eup %1505 }
 0x68e   : > { %v514_v62 = vadd.f32 1.0, %v1506_v61  ;;  %v1271_v61 = vld [vmem:[%s1874_s24 + $0x28] sm:$0xff] }
 0x690   : > { %1507 = vrcp.f32 %v514_v62 }
 0x69d   : > { %v1508_v63 = vpop.eup %1507 }
 0x69e   : > { %v518_v3 = vmul.f32 %v1508_v63, %v433_v45 }
 0x6fe   : > { %v521_v0 = vpop.permute.xlu1 %520 }
 0x6ff   : > { %v523_v2 = vmul.f32 %v1508_v63, %v521_v0 }
 0x701   : > { %525 = vrot.lane.b32.xlu0 %v523_v2, %s1748_s19 }
 0x773   : > { %v526_v4 = vpop.permute.xlu0 %525 }
 0x774   : > { %v528_v5 = vadd.f32 %v526_v4, %v518_v3 }
 0x776   : > { %1509 = vtanh.f32 %v528_v5 }
 0x783   : > { %v1510_v8 = vpop.eup %1509 }
 0x784   : > { %531 = vrot.lane.b32.xlu1 %v1510_v8, %s1747_s0 }
 0x7f6   : > { %v532_v9 = vpop.permute.xlu1 %531 }
 0x7f7   : > { %v1947_v10 = vmul.f32 %v1508_v63, %v532_v9 }
 0x7f9   : > { %v541_v11 = vpack.c.bf16 %v1947_v10, %v1947_v10 }
 0x7fb   : > { %549 = vrot.lane.b32.xlu0 %v541_v11, %s1748_s19 }
 0x86d   : > { %v550_v12 = vpop.permute.xlu0 %549 }
 0x86e   : > { %1354 = vmatmul.mubr.msk.bf16.vlgmr.msra.gmra.mxu1 %vm251_vm1, %v550_v12 }
 0x86f   : > { %1369 = vmatprep.mubr.msk.bf16.mxu1 %vm1746_vm0, %v1745_v1  ;;  %1366 = vmatpush3.bf16.msra.mxu1 %v1481_v54 }
 0x870   : > { %1367 = vmatprep.subr.bf16.mxu1 %v1745_v1 }
 0x873   : > { %1368 = vmatpush3.bf16.msra.mxu1 %v1482_v55 }
 0x874   : > { %1381 = vmatprep.subr.bf16.mxu1 %v1745_v1 }
 0x92e   : > { %v600_v14 = vpop.f32.mrf.mxu1 }
 0x92f   : > { %v601_v15 = vadd.f32 %v1259_v13, %v600_v14 }
 0x930   : > { %v1355_v16 = vpop.f32.mrf.mxu1 }
 0x931   : > { %1511 = vtanh.f32 %v601_v15  ;;  %v1263_v20 = vmul.f32 -1.442695, %v601_v15  ;;  %v1483_v15 = vld [vmem:[#allocation2 + $0x8] sm:$0xff]   ;;  %v1484_v16 = vld [vmem:[#allocation2] sm:$0xff]  }
 0x932   : > { %v603_v17 = vpop.f32.mrf.mxu1 }
 0x933   : > { %1513 = vpow2.f32 %v1263_v20 }
 0x934   : > { %v1356_v18 = vpop.f32.mrf.mxu1 }
 0x93e   : > { %v1512_v19 = vpop.eup %1511 }
 0x93f   : > { %615 = vrot.lane.b32.xlu1 %v1512_v19, %s1747_s0 }
 0x940   : > { %v1514_v21 = vpop.eup %1513 }
 0x941   : > { %v609_v22 = vadd.f32 1.0, %v1514_v21 }
 0x943   : > { %1515 = vrcp.f32 %v609_v22  ;;  %v1277_v22 = vld [vmem:[%s1874_s24 + $0x30] sm:$0xff] }
 0x950   : > { %v1516_v23 = vpop.eup %1515 }
 0x951   : > { %v613_v26 = vmul.f32 %v1516_v23, %v528_v5 }
 0x9b1   : > { %v616_v24 = vpop.permute.xlu1 %615 }
 0x9b2   : > { %v618_v25 = vmul.f32 %v1516_v23, %v616_v24 }
 0x9b4   : > { %620 = vrot.lane.b32.xlu0 %v618_v25, %s1748_s19 }
 0xa26   : > { %v621_v28 = vpop.permute.xlu0 %620 }
 0xa27   : > { %v623_v29 = vadd.f32 %v621_v28, %v613_v26 }
 0xa29   : > { %1517 = vtanh.f32 %v623_v29 }
 0xa36   : > { %v1518_v32 = vpop.eup %1517 }
 0xa37   : > { %626 = vrot.lane.b32.xlu1 %v1518_v32, %s1747_s0 }
 0xaa9   : > { %v627_v33 = vpop.permute.xlu1 %626 }
 0xaaa   : > { %v1961_v34 = vmul.f32 %v1516_v23, %v627_v33 }
 0xaac   : > { %v636_v35 = vpack.c.bf16 %v1961_v34, %v1961_v34 }
 0xaae   : > { %644 = vrot.lane.b32.xlu0 %v636_v35, %s1748_s19 }
 0xb20   : > { %v645_v36 = vpop.permute.xlu0 %644 }
 0xb21   : > { %1362 = vmatmul.mubr.msk.bf16.vlgmr.msra.gmra.mxu0 %vm251_vm1, %v645_v36 }
 0xb22   : > { %1377 = vmatprep.mubr.msk.bf16.mxu0 %vm1746_vm0, %v1745_v1  ;;  %1374 = vmatpush3.bf16.msra.mxu0 %v1483_v15 }
 0xb23   : > { %1375 = vmatprep.subr.bf16.mxu0 %v1745_v1 }
 0xb26   : > { %1376 = vmatpush3.bf16.msra.mxu0 %v1484_v16 }
 0xbe1   : > { %v695_v38 = vpop.f32.mrf.mxu0 }
 0xbe2   : > { %v696_v39 = vadd.f32 %v1265_v37, %v695_v38 }
 0xbe3   : > { %v1363_v40 = vpop.f32.mrf.mxu0 }
 0xbe4   : > { %1519 = vtanh.f32 %v696_v39  ;;  %v1269_v44 = vmul.f32 -1.442695, %v696_v39  ;;  %v1485_v40 = vld [vmem:[#allocation2 + $0x8] sm:$0xff]  }
 0xbe5   : > { %v698_v41 = vpop.f32.mrf.mxu0 }
 0xbe6   : > { %1521 = vpow2.f32 %v1269_v44  ;;  %v1486_v41 = vld [vmem:[#allocation2] sm:$0xff]  }
 0xbe7   : > { %v1364_v42 = vpop.f32.mrf.mxu0 }
 0xbf1   : > { %v1520_v43 = vpop.eup %1519 }
 0xbf2   : > { %710 = vrot.lane.b32.xlu1 %v1520_v43, %s1747_s0 }
 0xbf3   : > { %v1522_v45 = vpop.eup %1521 }
 0xbf4   : > { %v704_v46 = vadd.f32 1.0, %v1522_v45 }
 0xbf6   : > { %1523 = vrcp.f32 %v704_v46 }
 0xc03   : > { %v1524_v47 = vpop.eup %1523 }
 0xc04   : > { %v708_v51 = vmul.f32 %v1524_v47, %v623_v29 }
 0xc64   : > { %v711_v48 = vpop.permute.xlu1 %710 }
 0xc65   : > { %v713_v49 = vmul.f32 %v1524_v47, %v711_v48 }
 0xc67   : > { %715 = vrot.lane.b32.xlu0 %v713_v49, %s1748_s19 }
 0xcd9   : > { %v716_v52 = vpop.permute.xlu0 %715 }
 0xcda   : > { %v718_v53 = vadd.f32 %v716_v52, %v708_v51 }
 0xcdc   : > { %1525 = vtanh.f32 %v718_v53 }
 0xce9   : > { %v1526_v56 = vpop.eup %1525 }
 0xcea   : > { %721 = vrot.lane.b32.xlu1 %v1526_v56, %s1747_s0 }
 0xd5c   : > { %v722_v57 = vpop.permute.xlu1 %721 }
 0xd5d   : > { %v1975_v58 = vmul.f32 %v1524_v47, %v722_v57  ;;  %v1283_v47 = vld [vmem:[%s1874_s24 + $0x38] sm:$0xff]  ;;  %s1294_s24 = sshll.u32 %s1731_s18, 7 }
 0xd5e   : > { %s2036_s27 = scalar_lea.hbm %s2158_s3, %s1294_s24 }
 0xd5f   : > { %v731_v59 = vpack.c.bf16 %v1975_v58, %v1975_v58 }
 0xd61   : > { %739 = vrot.lane.b32.xlu0 %v731_v59, %s1748_s19 }
 0xdd3   : > { %v740_v60 = vpop.permute.xlu0 %739 }
 0xdd4   : > { %1370 = vmatmul.mubr.msk.bf16.vlgmr.msra.gmra.mxu1 %vm251_vm1, %v740_v60 }
 0xdd5   : > { %1385 = vmatprep.mubr.msk.bf16.mxu1 %vm1746_vm0, %v1745_v1  ;;  %1382 = vmatpush3.bf16.msra.mxu1 %v1485_v40 }
 0xdd6   : > { %1383 = vmatprep.subr.bf16.mxu1 %v1745_v1 }
 0xdd9   : > { %1384 = vmatpush3.bf16.msra.mxu1 %v1486_v41 }
 0xe94   : > { %v790_v62 = vpop.f32.mrf.mxu1 }
 0xe95   : > { %v791_v63 = vadd.f32 %v1271_v61, %v790_v62 }
 0xe96   : > { %v1371_v0 = vpop.f32.mrf.mxu1 }
 0xe97   : > { %1527 = vtanh.f32 %v791_v63  ;;  %v1275_v5 = vmul.f32 -1.442695, %v791_v63 }
 0xe98   : > { %v793_v2 = vpop.f32.mrf.mxu1 }
 0xe99   : > { %1529 = vpow2.f32 %v1275_v5 }
 0xe9a   : > { %v1372_v3 = vpop.f32.mrf.mxu1 }
 0xea4   : > { %v1528_v4 = vpop.eup %1527 }
 0xea5   : > { %805 = vrot.lane.b32.xlu1 %v1528_v4, %s1747_s0 }
 0xea6   : > { %v1530_v6 = vpop.eup %1529 }
 0xea7   : > { %v799_v7 = vadd.f32 1.0, %v1530_v6 }
 0xea9   : > { %1531 = vrcp.f32 %v799_v7 }
 0xeb6   : > { %v1532_v8 = vpop.eup %1531 }
 0xeb7   : > { %v803_v12 = vmul.f32 %v1532_v8, %v718_v53 }
 0xf17   : > { %v806_v9 = vpop.permute.xlu1 %805 }
 0xf18   : > { %v808_v11 = vmul.f32 %v1532_v8, %v806_v9 }
 0xf1a   : > { %810 = vrot.lane.b32.xlu0 %v808_v11, %s1748_s19 }
 0xf8c   : > { %v811_v13 = vpop.permute.xlu0 %810 }
 0xf8d   : > { %v813_v14 = vadd.f32 %v811_v13, %v803_v12 }
 0xf8f   : > { %1533 = vtanh.f32 %v813_v14 }
 0xf9c   : > { %v1534_v17 = vpop.eup %1533 }
 0xf9d   : > { %816 = vrot.lane.b32.xlu1 %v1534_v17, %s1747_s0 }
0x100f   : > { %v817_v18 = vpop.permute.xlu1 %816 }
0x1010   : > { %v819_v19 = vmul.f32 %v1532_v8, %v817_v18 }
0x1012   : > { %v826_v20 = vpack.c.bf16 %v819_v19, %v819_v19 }
0x1014   : > { %834 = vrot.lane.b32.xlu0 %v826_v20, %s1748_s19 }
0x1086   : > { %v835_v21 = vpop.permute.xlu0 %834 }
0x1087   : > { %1378 = vmatmul.mubr.msk.bf16.vlgmr.msra.gmra.mxu0 %vm251_vm1, %v835_v21 }
0x1147   : > { %v885_v23 = vpop.f32.mrf.mxu0 }
0x1148   : > { %v886_v24 = vadd.f32 %v1277_v22, %v885_v23 }
0x1149   : > { %v1379_v25 = vpop.f32.mrf.mxu0 }
0x114a   : > { %1535 = vtanh.f32 %v886_v24  ;;  %v1281_v30 = vmul.f32 -1.442695, %v886_v24 }
0x114b   : > { %v888_v26 = vpop.f32.mrf.mxu0 }
0x114c   : > { %1537 = vpow2.f32 %v1281_v30 }
0x114d   : > { %v1380_v28 = vpop.f32.mrf.mxu0 }
0x1157   : > { %v1536_v29 = vpop.eup %1535 }
0x1158   : > { %900 = vrot.lane.b32.xlu1 %v1536_v29, %s1747_s0 }
0x1159   : > { %v1538_v31 = vpop.eup %1537 }
0x115a   : > { %v894_v32 = vadd.f32 1.0, %v1538_v31 }
0x115c   : > { %1539 = vrcp.f32 %v894_v32 }
0x1169   : > { %v1540_v33 = vpop.eup %1539 }
0x116a   : > { %v898_v37 = vmul.f32 %v1540_v33, %v813_v14 }
0x11ca   : > { %v901_v35 = vpop.permute.xlu1 %900 }
0x11cb   : > { %v903_v36 = vmul.f32 %v1540_v33, %v901_v35 }
0x11cd   : > { %905 = vrot.lane.b32.xlu0 %v903_v36, %s1748_s19 }
0x123f   : > { %v906_v38 = vpop.permute.xlu0 %905 }
0x1240   : > { %v908_v39 = vadd.f32 %v906_v38, %v898_v37 }
0x1242   : > { %1541 = vtanh.f32 %v908_v39 }
0x124f   : > { %v1542_v42 = vpop.eup %1541 }
0x1250   : > { %911 = vrot.lane.b32.xlu1 %v1542_v42, %s1747_s0 }
0x12c2   : > { %v912_v43 = vpop.permute.xlu1 %911 }
0x12c3   : > { %v914_v44 = vmul.f32 %v1540_v33, %v912_v43 }
0x12c5   : > { %v921_v45 = vpack.c.bf16 %v914_v44, %v914_v44 }
0x12c7   : > { %929 = vrot.lane.b32.xlu0 %v921_v45, %s1748_s19 }
0x1339   : > { %v930_v46 = vpop.permute.xlu0 %929 }
0x133a   : > { %1386 = vmatmul.mubr.msk.bf16.vlgmr.msra.gmra.mxu1 %vm251_vm1, %v930_v46 }
0x13fa   : > { %v980_v48 = vpop.f32.mrf.mxu1 }
0x13fb   : > { %v981_v49 = vadd.f32 %v1283_v47, %v980_v48 }
0x13fc   : > { %v1387_v51 = vpop.f32.mrf.mxu1 }
0x13fd   : > { %1543 = vtanh.f32 %v981_v49  ;;  %v1287_v54 = vmul.f32 -1.442695, %v981_v49 }
0x13fe   : > { %v983_v52 = vpop.f32.mrf.mxu1 }
0x13ff   : > { %1545 = vpow2.f32 %v1287_v54 }
0x1400   : > { %v1388_v53 = vpop.f32.mrf.mxu1 }
0x140a   : > { %v1544_v1 = vpop.eup %1543 }
0x140b   : > { %995 = vrot.lane.b32.xlu1 %v1544_v1, %s1747_s0 }
0x140c   : > { %v1546_v55 = vpop.eup %1545 }
0x140d   : > { %v989_v56 = vadd.f32 1.0, %v1546_v55 }
0x140f   : > { %1547 = vrcp.f32 %v989_v56 }
0x141c   : > { %v1548_v57 = vpop.eup %1547 }
0x141d   : > { %v993_v61 = vmul.f32 %v1548_v57, %v908_v39 }
0x147d   : > { %v996_v59 = vpop.permute.xlu1 %995 }
0x147e   : > { %v998_v60 = vmul.f32 %v1548_v57, %v996_v59 }
0x1480   : > { %1000 = vrot.lane.b32.xlu0 %v998_v60, %s1748_s19 }
0x1484   : > { %441 = vrot.lane.b32.xlu0 %v1933_v50, %s1748_s19 }
0x1488   : > { %631 = vrot.lane.b32.xlu0 %v1961_v34, %s1748_s19 }
0x148c   : > { %821 = vrot.lane.b32.xlu0 %v819_v19, %s1748_s19 }
0x14f2   : > { %v1001_v62 = vpop.permute.xlu0 %1000 }
0x14f3   : > { %v1003_v63 = vadd.f32 %v1001_v62, %v993_v61 }
0x14f5   : > { %1549 = vtanh.f32 %v1003_v63 }
0x14f6   : > { %v442_v0 = vpop.permute.xlu0 %441 }
0x14f7   : > { %1252 = vst.msk [vmem:[%s1881_s12 + $0x8] sm:$0xff] %vm251_vm1, %v442_v0 }
0x14fa   : > { %v632_v2 = vpop.permute.xlu0 %631 }
0x14fb   : > { %1264 = vst.msk [vmem:[%s1881_s12 + $0x18] sm:$0xff] %vm251_vm1, %v632_v2 }
0x14fe   : > { %v822_v3 = vpop.permute.xlu0 %821 }
0x14ff   : > { %1276 = vst.msk [vmem:[%s1881_s12 + $0x28] sm:$0xff] %vm251_vm1, %v822_v3 }
0x1502   : > { %v1550_v50 = vpop.eup %1549 }
0x1503   : > { %1006 = vrot.lane.b32.xlu1 %v1550_v50, %s1747_s0  ;;  %s2044_s0 = scalar_lea.hbm %s2157_s2, %s1300_s8  ;;  %s1601_s8 = scalar_lea.vmem %s2038_s26, 128 }
0x1504   : > { %p1602_p13 = scmp.ne.s32.totalorder %s2038_s26, %s1601_s8 }
0x1506   : > { %p1603_p2 = pnand %p1602_p13, %p1835_p9 }
0x1507   : > { %347 = vrot.lane.b32.xlu1 %v1919_v27, %s1748_s19 }
0x1508   : > { %p1604_p12 = pneg %p1603_p2 }
0x150b   : > { %536 = vrot.lane.b32.xlu1 %v1947_v10, %s1748_s19 }
0x150f   : > { %726 = vrot.lane.b32.xlu1 %v1975_v58, %s1748_s19 }
0x1513   : > { %916 = vrot.lane.b32.xlu1 %v914_v44, %s1748_s19 }
0x1575   : > { %v1007_v34 = vpop.permute.xlu1 %1006 }
0x1576   : > { %v1009_v4 = vmul.f32 %v1548_v57, %v1007_v34 }
0x1578   : > { %1011 = vrot.lane.b32.xlu0 %v1009_v4, %s1748_s19  ;;  %s2056_s19 = scalar_lea.hbm %s2159_s4, %s1294_s24 }
0x1579   : > { %v348_v5 = vpop.permute.xlu1 %347 }
0x157a   : > { %350 = vst.msk [vmem:[%s1881_s12] sm:$0xff] %vm251_vm1, %v348_v5 }
0x157c   : > { %1018 = vrot.lane.b32.xlu0 %v1003_v63, %s1749_s22  ;;  %s2060_s22 = scalar_lea.sflag [#allocation10], %s1032_s23 }
0x157d   : > { %v537_v27 = vpop.permute.xlu1 %536 }
0x157e   : > { %1258 = vst.msk [vmem:[%s1881_s12 + $0x10] sm:$0xff] %vm251_vm1, %v537_v27 }
0x1581   : > { %v727_v10 = vpop.permute.xlu1 %726 }
0x1582   : > { %1270 = vst.msk [vmem:[%s1881_s12 + $0x20] sm:$0xff] %vm251_vm1, %v727_v10 }
0x1585   : > { %v917_v58 = vpop.permute.xlu1 %916 }
0x1586   : > { %1282 = vst.msk [vmem:[%s1881_s12 + $0x30] sm:$0xff] %vm251_vm1, %v917_v58 }
0x15ea   : > { %v1012_v6 = vpop.permute.xlu0 %1011 }
0x15eb   : > { %1288 = vst.msk [vmem:[%s1881_s12 + $0x38] sm:$0xff] %vm251_vm1, %v1012_v6  ;;  %1016 = vst.msk [vmem:[#allocation3] sm:$0xff] %vm251_vm1, %v1012_v6  ;;  %s1605_s12 = sshll.u32 %s1750_s25, 4  ;;  %s1606_s12 = int_to_ptr.vmem [resolvable:$false] %s1605_s12 }
0x15ec   : > { %1025 = vst.msk [vmem:[%s1883_s13] sm:$0xff] %vm251_vm1, %v1012_v6  ;;  %s1607_s5 = scalar_lea.vmem %s1606_s12, 256  ;;  %p1608_p8 = scmp.lt.s32.totalorder %s2038_s26, %s1606_s12 }
0x15ed   : > { %p1609_p0 = scmp.lt.s32.totalorder %s1607_s5, %s1601_s8 }
0x15ef   : > { %p1610_p1 = por %p1609_p0, %p1608_p8 }
0x15f1   : > { %p1611_p3 = pnand %p1610_p1, %p1604_p12 }
0x15f3   : > { %1614 = shalt.err (!%p1611_p3)
}
0x15f4   : > { %s1615_s13 = scalar_lea.hbm %s2036_s27, 128  ;;  %s1619_s9 = scalar_lea.hbm %s2158_s3, 256 }
0x15f5   : > { %p1616_p5 = scmp.ne.s32.totalorder %s2036_s27, %s1615_s13  ;;  %p1620_p10 = scmp.lt.s32.totalorder %s2036_s27, %s2158_s3 }
0x15f6   : > { %p1621_p4 = scmp.lt.s32.totalorder %s1619_s9, %s1615_s13 }
0x15f7   : > { %p1617_p6 = pnand %p1616_p5, %p1835_p9 }
0x15f8   : > { %p1622_p13 = por %p1621_p4, %p1620_p10 }
0x15f9   : > { %p1618_p7 = pneg %p1617_p6 }
0x15fb   : > { %p1623_p2 = pnand %p1622_p13, %p1618_p7 }
0x15fd   : > { %1626 = shalt.err (!%p1623_p2)
}
0x15fe   : > { %1392 = dma.vmem_to_hbm [thread:$0]  (%p1835_p9), %s2038_s26, 128, %s2036_s27, %s2060_s22  }
0x15ff   : > { %s1028_s21 = scalar_lea.sflag [#allocation7], %s1870_s7  ;;  %s1627_s8 = scalar_lea.vmem %s2046_s6, 1024 }
0x1600   : > { %p1628_p12 = scmp.ne.s32.totalorder %s2046_s6, %s1627_s8  ;;  %s1751_s25 = smov [#allocation8]  }
0x1601   : > { %s1631_s12 = sshll.u32 %s1751_s25, 4  ;;  %s1632_s12 = int_to_ptr.vmem [resolvable:$false] %s1631_s12 }
0x1602   : > { %p1629_p8 = pnand %p1628_p12, %p1835_p9  ;;  %s1633_s5 = scalar_lea.vmem %s1632_s12, 2048 }
0x1603   : > { %p1634_p1 = scmp.lt.s32.totalorder %s2046_s6, %s1632_s12  ;;  %p1635_p3 = scmp.lt.s32.totalorder %s1633_s5, %s1627_s8 }
0x1604   : > { %p1630_p0 = pneg %p1629_p8 }
0x1605   : > { %p1636_p5 = por %p1635_p3, %p1634_p1 }
0x1607   : > { %p1637_p6 = pnand %p1636_p5, %p1630_p0 }
0x1609   : > { %1640 = shalt.err (!%p1637_p6)
}
0x160a   : > { %s1641_s26 = scalar_lea.hbm %s2044_s0, 1024  ;;  %s1645_s23 = scalar_lea.hbm %s2157_s2, 2048 }
0x160b   : > { %p1642_p7 = scmp.ne.s32.totalorder %s2044_s0, %s1641_s26  ;;  %p1646_p13 = scmp.lt.s32.totalorder %s2044_s0, %s2157_s2 }
0x160c   : > { %p1647_p2 = scmp.lt.s32.totalorder %s1645_s23, %s1641_s26 }
0x160d   : > { %p1643_p10 = pnand %p1642_p7, %p1835_p9 }
0x160e   : > { %p1648_p12 = por %p1647_p2, %p1646_p13 }
0x160f   : > { %p1644_p4 = pneg %p1643_p10 }
0x1611   : > { %p1649_p8 = pnand %p1648_p12, %p1644_p4 }
0x1613   : > { %1652 = shalt.err (!%p1649_p8)
}
0x1614   : > { %s1752_s10 = smov 128   ;;  %s1753_s18 = smov 8   ;;  %v1019_v7 = vpop.permute.xlu0 %1018 }
0x1615   : > { %1391 = dma.vmem_to_hbm [thread:$0]  (%p1835_p9), %s2046_s6, 1024, %s2044_s0, %s1028_s21, %s1752_s10, %s1752_s10, %s1753_s18   ;;  %1021 = vst.msk [vmem:[#allocation4] sm:$0xff] %vm251_vm1, %v1019_v7 }
0x1616   : > { %1026 = vst.msk [vmem:[%s1885_s14] sm:$0xff] %vm251_vm1, %v1019_v7  ;;  %s1653_s8 = scalar_lea.vmem %s2058_s11, 128  ;;  %s1754_s25 = smov [#allocation11]  }
0x1617   : > { %p1654_p0 = scmp.ne.s32.totalorder %s2058_s11, %s1653_s8  ;;  %s1657_s12 = sshll.u32 %s1754_s25, 4  ;;  %s1658_s12 = int_to_ptr.vmem [resolvable:$false] %s1657_s12 }
0x1618   : > { %s1659_s5 = scalar_lea.vmem %s1658_s12, 256  ;;  %p1660_p5 = scmp.lt.s32.totalorder %s2058_s11, %s1658_s12 }
0x1619   : > { %p1655_p1 = pnand %p1654_p0, %p1835_p9  ;;  %p1661_p6 = scmp.lt.s32.totalorder %s1659_s5, %s1653_s8 }
0x161b   : > { %p1656_p3 = pneg %p1655_p1  ;;  %p1662_p7 = por %p1661_p6, %p1660_p5 }
0x161d   : > { %p1663_p10 = pnand %p1662_p7, %p1656_p3 }
0x161f   : > { %1666 = shalt.err (!%p1663_p10)
}
0x1620   : > { %s1667_s7 = scalar_lea.hbm %s2056_s19, 128  ;;  %s1671_s0 = scalar_lea.hbm %s2159_s4, 256 }
0x1621   : > { %p1668_p4 = scmp.ne.s32.totalorder %s2056_s19, %s1667_s7  ;;  %p1672_p12 = scmp.lt.s32.totalorder %s2056_s19, %s2159_s4 }
0x1622   : > { %p1673_p8 = scmp.lt.s32.totalorder %s1671_s0, %s1667_s7 }
0x1623   : > { %p1669_p13 = pnand %p1668_p4, %p1835_p9 }
0x1624   : > { %p1674_p0 = por %p1673_p8, %p1672_p12 }
0x1625   : > { %p1670_p2 = pneg %p1669_p13 }
0x1627   : > { %p1675_p1 = pnand %p1674_p0, %p1670_p2 }
0x1629   : > { %1678 = shalt.err (!%p1675_p1)
}
0x162a   : > { %1393 = dma.vmem_to_hbm [thread:$0]  (%p1835_p9), %s2058_s11, 128, %s2056_s19, %s2060_s22  }
0x162b PF: > { %s1094_s27 = sand.u32 1, %s1719_s15   ;;  %p2172_p3 = scmp.ge.s32.totalorder %s1739_s20, 2 }
0x162c   : > { %s1095_s13 = scalar_lea.sflag [#allocation7], %s1094_s27 }
0x162d   : > { %p1402_p5 = pnand %p2172_p3, %p1844_p11 }
0x162f   : > { %p1403_p6 = pneg %p1402_p5 }
0x1631   : > { %1710 = dma.done.wait (%p1403_p6), %s1095_s13, 1024  }
0x1632   : > { %1712 = vsyncadd (%p1403_p6), %s1095_s13, 4294966272  ;;  %s2173_s23 = sadd.s32 4294967294, %s1739_s20  }
0x1633   : > { %s1103_s24 = sand.u32 1, %s2173_s23  }
0x1634   : > { %s1104_s28 = scalar_lea.sflag [#allocation10], %s1103_s24 }
0x1635   : > { %1714 = dma.done.wait (%p1403_p6), %s1104_s28, 256  }
0x1636   : > { %1716 = vsyncadd (%p1403_p6), %s1104_s28, 4294967040  ;;  %s24_s20 = sadd.s32 1, %s1739_s20   ;;  %s2174_s18 = sld [smem:[#allocation21_spill]] }
0x1637   : > { %p21_p9 = scmp.ge.s32.totalorder %s24_s20, 4   ;;  %s2175_s19 = sld [smem:[#allocation22_spill]] }
0x1638   : > { %s2176_s15 = smov %s1723_s16  ;;  %s2177_s16 = smov %s1727_s17 }
0x1639   : > { %s2178_s17 = smov %s1842_s29  ;;  %23 = sbr.rel (!%p21_p9) target bundleno = 10 (0xa), region = 129 }
0x163e   :  { %1118 = vsyncpa [#allocation6], 1 }
0x163f   :  { %1120 = vsyncpa [#allocation6 + $0x1], 1 }
0x1640   :  { %1121 = vsyncpa [#allocation7], 1 }
0x1641   :  { %1123 = vsyncpa [#allocation7 + $0x1], 1 }
0x1642   :  { %1124 = vsyncpa [#allocation10], 1 }
0x1643   :  { %1126 = vsyncpa [#allocation10 + $0x1], 1 }

</bundles_post_ra>
